<compile_context>
chip_gen: v6e
topology: v6e:2x2x1
jax: 0.10.0
libtpu: 0.0.40
codegen_flags: <defaults>
</compile_context>

<pallas_src>
import functools
import math

import jax
import jax.numpy as jnp
from jax.experimental import pallas as pl
from jax.experimental.pallas import tpu as pltpu

_INV_SQRT2 = 1.0 / math.sqrt(2.0)


# ----------------------------------------------------------------------------
# Kernel 1: depthwise 7x7 convolution (padding=3, groups=C), NCHW layout.
# ----------------------------------------------------------------------------
def _dwconv7_kernel(w_smem, b_smem, x_ref, o_ref, *, H, W, K):
    # x_ref: (H+2P, W+2P) halo-padded plane for (n, c); o_ref: (H, W).
    c = pl.program_id(1)
    base = c * (K * K)
    acc = jnp.zeros((H, W), jnp.float32)
    for ky in range(K):                      # 49 taps, fully unrolled (VPU)
        for kx in range(K):
            tap = w_smem[base + ky * K + kx]             # scalar from SMEM
            acc = acc + x_ref[ky:ky + H, kx:kx + W].astype(jnp.float32) * tap
    o_ref[...] = (acc + b_smem[c]).astype(o_ref.dtype)


def _depthwise_conv7x7(x, dw_w, dw_b):
    N, C, H, W = x.shape
    K, P = 7, 3
    Hp, Wp = H + 2 * P, W + 2 * P
    # Halo padding for the 7x7 window, done once.
    # TODO(synk): an in-kernel masked halo read would avoid this extra small HBM pass.
    xp = jnp.pad(x, ((0, 0), (0, 0), (P, P), (P, P)))
    w_flat = dw_w.reshape(C * K * K).astype(jnp.float32)
    b_flat = dw_b.reshape(C).astype(jnp.float32)
    return pl.pallas_call(
        functools.partial(_dwconv7_kernel, H=H, W=W, K=K),
        out_shape=jax.ShapeDtypeStruct((N, C, H, W), x.dtype),
        grid=(N, C),
        in_specs=[
            pl.BlockSpec(memory_space=pltpu.MemorySpace.SMEM),   # filter taps
            pl.BlockSpec(memory_space=pltpu.MemorySpace.SMEM),   # conv bias
            pl.BlockSpec((None, None, Hp, Wp), lambda n, c: (n, c, 0, 0)),
        ],
        out_specs=pl.BlockSpec((None, None, H, W), lambda n, c: (n, c, 0, 0)),
        compiler_params=pltpu.CompilerParams(
            dimension_semantics=("parallel", "parallel")),
    )(w_flat, b_flat, xp)


# ----------------------------------------------------------------------------
# Kernel 2: fused LayerNorm(C) + Linear(C->4C) + exact GELU + Linear(4C->C)
#           + gamma scale + residual add, over rows of the NHWC tensor.
# ----------------------------------------------------------------------------
def _fused_ln_mlp_kernel(dw_ref, res_ref, lnw_ref, lnb_ref, w1_ref, b1_ref,
                         w2_ref, b2_ref, g_ref, o_ref, *, eps):
    x = dw_ref[...].astype(jnp.float32)                      # (TM, C)
    # Single-sweep statistics (biased variance, eps inside the sqrt).
    mean = jnp.mean(x, axis=-1, keepdims=True)
    mean_sq = jnp.mean(x * x, axis=-1, keepdims=True)
    var = mean_sq - mean * mean
    inv = jax.lax.rsqrt(var + eps)
    y = (x - mean) * inv
    y = y * lnw_ref[...].astype(jnp.float32) + lnb_ref[...].astype(jnp.float32)
    # pwconv1 + exact (erf) GELU, matching PyTorch nn.GELU() default.
    h = jnp.dot(y, w1_ref[...].astype(jnp.float32),
                preferred_element_type=jnp.float32) + b1_ref[...].astype(jnp.float32)
    h = 0.5 * h * (1.0 + jax.lax.erf(h * _INV_SQRT2))
    # pwconv2 + layer scale + residual.
    z = jnp.dot(h, w2_ref[...].astype(jnp.float32),
                preferred_element_type=jnp.float32) + b2_ref[...].astype(jnp.float32)
    z = z * g_ref[...].astype(jnp.float32)
    o_ref[...] = (res_ref[...].astype(jnp.float32) + z).astype(o_ref.dtype)


def _pick_row_tile(M, C, H4):
    # Mem-bound streaming kernel: take the largest row tile whose
    # double-buffered in/out blocks plus the (TM, 4C) hidden activations stay
    # within ~8 MiB, which fits the default scoped VMEM on v5e/v6e/v7x.
    bytes_per_row = 4 * (2 * 3 * C + 2 * H4)
    budget = 8 * 1024 * 1024
    tm = budget // max(bytes_per_row, 1)
    tm = max(8, min(tm, 2048))
    m_ceil = ((M + 7) // 8) * 8
    return max(8, (min(tm, m_ceil) // 8) * 8)


def _fused_ln_mlp_residual(dw_rows, res_rows, ln_w, ln_b, w1t, b1, w2t, b2,
                           gamma, *, eps, row_tile=None):
    M, C = dw_rows.shape
    H4 = w1t.shape[1]
    if row_tile is None:
        TM = _pick_row_tile(M, C, H4)
    else:
        TM = max(8, (int(row_tile) // 8) * 8)
    grid = (pl.cdiv(M, TM),)                 # ragged last block: rows independent
    row_spec = pl.BlockSpec((TM, C), lambda i: (i, 0))

    def full_spec(shape):
        return pl.BlockSpec(shape, lambda i: (0,) * len(shape))

    return pl.pallas_call(
        functools.partial(_fused_ln_mlp_kernel, eps=eps),
        out_shape=jax.ShapeDtypeStruct((M, C), dw_rows.dtype),
        grid=grid,
        in_specs=[
            row_spec,                        # dwconv output rows (NHWC)
            row_spec,                        # residual rows (NHWC)
            full_spec((1, C)),               # LayerNorm weight
            full_spec((1, C)),               # LayerNorm bias
            full_spec((C, H4)),              # pwconv1 weight (transposed)
            full_spec((1, H4)),              # pwconv1 bias
            full_spec((H4, C)),              # pwconv2 weight (transposed)
            full_spec((1, C)),               # pwconv2 bias
            full_spec((1, C)),               # gamma (layer scale)
        ],
        out_specs=row_spec,
        compiler_params=pltpu.CompilerParams(
            dimension_semantics=("parallel",),
            vmem_limit_bytes=32 * 1024 * 1024),
    )(dw_rows, res_rows,
      ln_w.reshape(1, C), ln_b.reshape(1, C),
      w1t, b1.reshape(1, H4), w2t, b2.reshape(1, C), gamma.reshape(1, C))


# ----------------------------------------------------------------------------
# ConvBlock forward (PyTorch weight conventions: Linear weight is (out, in)).
# ----------------------------------------------------------------------------
def conv_block(x, dw_w, dw_b, ln_w, ln_b, w1, b1, w2, b2, gamma, *,
               eps=1e-6, row_tile=None):
    N, C, H, W = x.shape
    assert dw_w.shape == (C, 1, 7, 7)
    dw = _depthwise_conv7x7(x, dw_w, dw_b)                       # Pallas
    # The module's own permute(0, 2, 3, 1): layout glue only.
    dw_rows = jnp.transpose(dw, (0, 2, 3, 1)).reshape(-1, C)
    res_rows = jnp.transpose(x, (0, 2, 3, 1)).reshape(-1, C)
    y_rows = _fused_ln_mlp_residual(
        dw_rows, res_rows, ln_w, ln_b, w1.T, b1, w2.T, b2, gamma,
        eps=eps, row_tile=row_tile)                              # Pallas (fused)
    y = y_rows.reshape(N, H, W, C)
    # The module's permute(0, 3, 1, 2) back to NCHW.
    # drop_path=0.0 -> Identity, residual already added in the fused kernel.
    return jnp.transpose(y, (0, 3, 1, 2))


# ----------------------------------------------------------------------------
# Pure-JAX reference mirroring the PyTorch forward.
# ----------------------------------------------------------------------------
def _reference(x, dw_w, dw_b, ln_w, ln_b, w1, b1, w2, b2, gamma, eps):
    N, C, H, W = x.shape
    hp = jax.lax.Precision.HIGHEST
    dw = jax.lax.conv_general_dilated(
        x, dw_w, window_strides=(1, 1), padding=((3, 3), (3, 3)),
        feature_group_count=C, dimension_numbers=("NCHW", "OIHW", "NCHW"),
        precision=hp)
    dw = dw + dw_b[None, :, None, None]
    t = jnp.transpose(dw, (0, 2, 3, 1)).astype(jnp.float32)
    u = t.mean(-1, keepdims=True)
    s = ((t - u) ** 2).mean(-1, keepdims=True)
    t = (t - u) / jnp.sqrt(s + eps) * ln_w + ln_b
    h = jnp.matmul(t, w1.T, precision=hp) + b1
    h = 0.5 * h * (1.0 + jax.lax.erf(h * _INV_SQRT2))
    z = jnp.matmul(h, w2.T, precision=hp) + b2
    z = gamma * z
    z = jnp.transpose(z, (0, 3, 1, 2))
    return (x + z).astype(x.dtype)


if __name__ == "__main__":
    key = jax.random.PRNGKey(0)
    eps = 1e-6

    def run_case(kbase, N, C, H, W, row_tile=None):
        k = jax.random.split(kbase, 10)
        x = jax.random.normal(k[0], (N, C, H, W), jnp.float32)
        dw_w = 0.1 * jax.random.normal(k[1], (C, 1, 7, 7), jnp.float32)
        dw_b = 0.1 * jax.random.normal(k[2], (C,), jnp.float32)
        ln_w = 1.0 + 0.1 * jax.random.normal(k[3], (C,), jnp.float32)
        ln_b = 0.1 * jax.random.normal(k[4], (C,), jnp.float32)
        w1 = 0.3 * jax.random.normal(k[5], (4 * C, C), jnp.float32)
        b1 = 0.1 * jax.random.normal(k[6], (4 * C,), jnp.float32)
        w2 = 0.3 * jax.random.normal(k[7], (C, 4 * C), jnp.float32)
        b2 = 0.1 * jax.random.normal(k[8], (C,), jnp.float32)
        # gamma is a trained layer-scale parameter; use O(0.5) values so the
        # MLP branch is actually exercised by the check.
        gamma = 0.5 + 0.1 * jax.random.normal(k[9], (C,), jnp.float32)

        y = conv_block(x, dw_w, dw_b, ln_w, ln_b, w1, b1, w2, b2, gamma,
                       eps=eps, row_tile=row_tile)
        y = jax.block_until_ready(y)
        ref = _reference(x, dw_w, dw_b, ln_w, ln_b, w1, b1, w2, b2, gamma, eps)
        assert y.shape == x.shape and y.dtype == x.dtype
        # MXU f32 matmuls at default precision differ slightly from the
        # HIGHEST-precision XLA reference; semantic bugs give O(0.1+) errors.
        err = float(jnp.max(jnp.abs(y - ref)))
        assert jnp.allclose(y, ref, atol=3e-3, rtol=3e-3), err

    k1, k2 = jax.random.split(key)
    # ConvBlock(dim=4) on a (2, 4, 16, 16) NCHW input.
    run_case(k1, 2, 4, 16, 16)
    # dim=8 with ragged spatial size and a forced small row tile: exercises the
    # cdiv grid with a non-dividing last block and multi-step weight residency.
    run_case(k2, 2, 8, 15, 15, row_tile=128)
    print("KERNEL_OK")
</pallas_src>

<mosaic_0001>
module attributes {stable_mosaic.version = 11 : i64} {
  func.func @_dwconv7_kernel(%arg0: i32, %arg1: i32, %arg2: memref<196xf32, #tpu.memory_space<smem>>, %arg3: memref<4xf32, #tpu.memory_space<smem>>, %arg4: memref<1x1x22x22xf32, #tpu.memory_space<vmem>>, %arg5: memref<1x1x16x16xf32, #tpu.memory_space<vmem>>) attributes {dimension_semantics = [#tpu.dimension_semantics<parallel>, #tpu.dimension_semantics<parallel>], iteration_bounds = array<i64: 2, 4>, scalar_prefetch = 0 : i64, scratch_operands = 0 : i64, tpu.core_type = #tpu.core_type<tc>, window_params = [{transform_indices = @transform_0, window_bounds = array<i64: 196>}, {transform_indices = @transform_1, window_bounds = array<i64: 4>}, {transform_indices = @transform_2, window_bounds = array<i64: 1, 1, 22, 22>}, {transform_indices = @transform_3, window_bounds = array<i64: 1, 1, 16, 16>}]} {
    %c49_i32 = arith.constant 49 : i32
    %0 = arith.muli %arg1, %c49_i32 : i32
    %cst = arith.constant 0.000000e+00 : f32
    %1 = vector.broadcast %cst : f32 to vector<16x16xf32>
    %c0_i32 = arith.constant 0 : i32
    %2 = arith.addi %0, %c0_i32 : i32
    %c0_i32_0 = arith.constant 0 : i32
    %3 = arith.addi %2, %c0_i32_0 : i32
    %4 = arith.index_cast %3 : i32 to index
    %5 = memref.load %arg2[%4] : memref<196xf32, #tpu.memory_space<smem>>
    %c0 = arith.constant 0 : index
    %c0_1 = arith.constant 0 : index
    %c0_2 = arith.constant 0 : index
    %c0_3 = arith.constant 0 : index
    %6 = vector.load %arg4[%c0, %c0_1, %c0_2, %c0_3] : memref<1x1x22x22xf32, #tpu.memory_space<vmem>>, vector<1x1x16x16xf32>
    %7 = vector.shape_cast %6 : vector<1x1x16x16xf32> to vector<16x16xf32>
    %8 = vector.broadcast %5 : f32 to vector<16x16xf32>
    %9 = arith.mulf %7, %8 : vector<16x16xf32>
    %10 = arith.addf %1, %9 : vector<16x16xf32>
    %c0_i32_4 = arith.constant 0 : i32
    %11 = arith.addi %0, %c0_i32_4 : i32
    %c1_i32 = arith.constant 1 : i32
    %12 = arith.addi %11, %c1_i32 : i32
    %13 = arith.index_cast %12 : i32 to index
    %14 = memref.load %arg2[%13] : memref<196xf32, #tpu.memory_space<smem>>
    %c0_5 = arith.constant 0 : index
    %c0_6 = arith.constant 0 : index
    %c0_7 = arith.constant 0 : index
    %c1 = arith.constant 1 : index
    %15 = vector.load %arg4[%c0_5, %c0_6, %c0_7, %c1] : memref<1x1x22x22xf32, #tpu.memory_space<vmem>>, vector<1x1x16x16xf32>
    %16 = vector.shape_cast %15 : vector<1x1x16x16xf32> to vector<16x16xf32>
    %17 = vector.broadcast %14 : f32 to vector<16x16xf32>
    %18 = arith.mulf %16, %17 : vector<16x16xf32>
    %19 = arith.addf %10, %18 : vector<16x16xf32>
    %c0_i32_8 = arith.constant 0 : i32
    %20 = arith.addi %0, %c0_i32_8 : i32
    %c2_i32 = arith.constant 2 : i32
    %21 = arith.addi %20, %c2_i32 : i32
    %22 = arith.index_cast %21 : i32 to index
    %23 = memref.load %arg2[%22] : memref<196xf32, #tpu.memory_space<smem>>
    %c0_9 = arith.constant 0 : index
    %c0_10 = arith.constant 0 : index
    %c0_11 = arith.constant 0 : index
    %c2 = arith.constant 2 : index
    %24 = vector.load %arg4[%c0_9, %c0_10, %c0_11, %c2] : memref<1x1x22x22xf32, #tpu.memory_space<vmem>>, vector<1x1x16x16xf32>
    %25 = vector.shape_cast %24 : vector<1x1x16x16xf32> to vector<16x16xf32>
    %26 = vector.broadcast %23 : f32 to vector<16x16xf32>
    %27 = arith.mulf %25, %26 : vector<16x16xf32>
    %28 = arith.addf %19, %27 : vector<16x16xf32>
    %c0_i32_12 = arith.constant 0 : i32
    %29 = arith.addi %0, %c0_i32_12 : i32
    %c3_i32 = arith.constant 3 : i32
    %30 = arith.addi %29, %c3_i32 : i32
    %31 = arith.index_cast %30 : i32 to index
    %32 = memref.load %arg2[%31] : memref<196xf32, #tpu.memory_space<smem>>
    %c0_13 = arith.constant 0 : index
    %c0_14 = arith.constant 0 : index
    %c0_15 = arith.constant 0 : index
    %c3 = arith.constant 3 : index
    %33 = vector.load %arg4[%c0_13, %c0_14, %c0_15, %c3] : memref<1x1x22x22xf32, #tpu.memory_space<vmem>>, vector<1x1x16x16xf32>
    %34 = vector.shape_cast %33 : vector<1x1x16x16xf32> to vector<16x16xf32>
    %35 = vector.broadcast %32 : f32 to vector<16x16xf32>
    %36 = arith.mulf %34, %35 : vector<16x16xf32>
    %37 = arith.addf %28, %36 : vector<16x16xf32>
    %c0_i32_16 = arith.constant 0 : i32
    %38 = arith.addi %0, %c0_i32_16 : i32
    %c4_i32 = arith.constant 4 : i32
    %39 = arith.addi %38, %c4_i32 : i32
    %40 = arith.index_cast %39 : i32 to index
    %41 = memref.load %arg2[%40] : memref<196xf32, #tpu.memory_space<smem>>
    %c0_17 = arith.constant 0 : index
    %c0_18 = arith.constant 0 : index
    %c0_19 = arith.constant 0 : index
    %c4 = arith.constant 4 : index
    %42 = vector.load %arg4[%c0_17, %c0_18, %c0_19, %c4] : memref<1x1x22x22xf32, #tpu.memory_space<vmem>>, vector<1x1x16x16xf32>
    %43 = vector.shape_cast %42 : vector<1x1x16x16xf32> to vector<16x16xf32>
    %44 = vector.broadcast %41 : f32 to vector<16x16xf32>
    %45 = arith.mulf %43, %44 : vector<16x16xf32>
    %46 = arith.addf %37, %45 : vector<16x16xf32>
    %c0_i32_20 = arith.constant 0 : i32
    %47 = arith.addi %0, %c0_i32_20 : i32
    %c5_i32 = arith.constant 5 : i32
    %48 = arith.addi %47, %c5_i32 : i32
    %49 = arith.index_cast %48 : i32 to index
    %50 = memref.load %arg2[%49] : memref<196xf32, #tpu.memory_space<smem>>
    %c0_21 = arith.constant 0 : index
    %c0_22 = arith.constant 0 : index
    %c0_23 = arith.constant 0 : index
    %c5 = arith.constant 5 : index
    %51 = vector.load %arg4[%c0_21, %c0_22, %c0_23, %c5] : memref<1x1x22x22xf32, #tpu.memory_space<vmem>>, vector<1x1x16x16xf32>
    %52 = vector.shape_cast %51 : vector<1x1x16x16xf32> to vector<16x16xf32>
    %53 = vector.broadcast %50 : f32 to vector<16x16xf32>
    %54 = arith.mulf %52, %53 : vector<16x16xf32>
    %55 = arith.addf %46, %54 : vector<16x16xf32>
    %c0_i32_24 = arith.constant 0 : i32
    %56 = arith.addi %0, %c0_i32_24 : i32
    %c6_i32 = arith.constant 6 : i32
    %57 = arith.addi %56, %c6_i32 : i32
    %58 = arith.index_cast %57 : i32 to index
    %59 = memref.load %arg2[%58] : memref<196xf32, #tpu.memory_space<smem>>
    %c0_25 = arith.constant 0 : index
    %c0_26 = arith.constant 0 : index
    %c0_27 = arith.constant 0 : index
    %c6 = arith.constant 6 : index
    %60 = vector.load %arg4[%c0_25, %c0_26, %c0_27, %c6] : memref<1x1x22x22xf32, #tpu.memory_space<vmem>>, vector<1x1x16x16xf32>
    %61 = vector.shape_cast %60 : vector<1x1x16x16xf32> to vector<16x16xf32>
    %62 = vector.broadcast %59 : f32 to vector<16x16xf32>
    %63 = arith.mulf %61, %62 : vector<16x16xf32>
    %64 = arith.addf %55, %63 : vector<16x16xf32>
    %c7_i32 = arith.constant 7 : i32
    %65 = arith.addi %0, %c7_i32 : i32
    %c0_i32_28 = arith.constant 0 : i32
    %66 = arith.addi %65, %c0_i32_28 : i32
    %67 = arith.index_cast %66 : i32 to index
    %68 = memref.load %arg2[%67] : memref<196xf32, #tpu.memory_space<smem>>
    %c0_29 = arith.constant 0 : index
    %c0_30 = arith.constant 0 : index
    %c1_31 = arith.constant 1 : index
    %c0_32 = arith.constant 0 : index
    %69 = vector.load %arg4[%c0_29, %c0_30, %c1_31, %c0_32] : memref<1x1x22x22xf32, #tpu.memory_space<vmem>>, vector<1x1x16x16xf32>
    %70 = vector.shape_cast %69 : vector<1x1x16x16xf32> to vector<16x16xf32>
    %71 = vector.broadcast %68 : f32 to vector<16x16xf32>
    %72 = arith.mulf %70, %71 : vector<16x16xf32>
    %73 = arith.addf %64, %72 : vector<16x16xf32>
    %c7_i32_33 = arith.constant 7 : i32
    %74 = arith.addi %0, %c7_i32_33 : i32
    %c1_i32_34 = arith.constant 1 : i32
    %75 = arith.addi %74, %c1_i32_34 : i32
    %76 = arith.index_cast %75 : i32 to index
    %77 = memref.load %arg2[%76] : memref<196xf32, #tpu.memory_space<smem>>
    %c0_35 = arith.constant 0 : index
    %c0_36 = arith.constant 0 : index
    %c1_37 = arith.constant 1 : index
    %c1_38 = arith.constant 1 : index
    %78 = vector.load %arg4[%c0_35, %c0_36, %c1_37, %c1_38] : memref<1x1x22x22xf32, #tpu.memory_space<vmem>>, vector<1x1x16x16xf32>
    %79 = vector.shape_cast %78 : vector<1x1x16x16xf32> to vector<16x16xf32>
    %80 = vector.broadcast %77 : f32 to vector<16x16xf32>
    %81 = arith.mulf %79, %80 : vector<16x16xf32>
    %82 = arith.addf %73, %81 : vector<16x16xf32>
    %c7_i32_39 = arith.constant 7 : i32
    %83 = arith.addi %0, %c7_i32_39 : i32
    %c2_i32_40 = arith.constant 2 : i32
    %84 = arith.addi %83, %c2_i32_40 : i32
    %85 = arith.index_cast %84 : i32 to index
    %86 = memref.load %arg2[%85] : memref<196xf32, #tpu.memory_space<smem>>
    %c0_41 = arith.constant 0 : index
    %c0_42 = arith.constant 0 : index
    %c1_43 = arith.constant 1 : index
    %c2_44 = arith.constant 2 : index
    %87 = vector.load %arg4[%c0_41, %c0_42, %c1_43, %c2_44] : memref<1x1x22x22xf32, #tpu.memory_space<vmem>>, vector<1x1x16x16xf32>
    %88 = vector.shape_cast %87 : vector<1x1x16x16xf32> to vector<16x16xf32>
    %89 = vector.broadcast %86 : f32 to vector<16x16xf32>
    %90 = arith.mulf %88, %89 : vector<16x16xf32>
    %91 = arith.addf %82, %90 : vector<16x16xf32>
    %c7_i32_45 = arith.constant 7 : i32
    %92 = arith.addi %0, %c7_i32_45 : i32
    %c3_i32_46 = arith.constant 3 : i32
    %93 = arith.addi %92, %c3_i32_46 : i32
    %94 = arith.index_cast %93 : i32 to index
    %95 = memref.load %arg2[%94] : memref<196xf32, #tpu.memory_space<smem>>
    %c0_47 = arith.constant 0 : index
    %c0_48 = arith.constant 0 : index
    %c1_49 = arith.constant 1 : index
    %c3_50 = arith.constant 3 : index
    %96 = vector.load %arg4[%c0_47, %c0_48, %c1_49, %c3_50] : memref<1x1x22x22xf32, #tpu.memory_space<vmem>>, vector<1x1x16x16xf32>
    %97 = vector.shape_cast %96 : vector<1x1x16x16xf32> to vector<16x16xf32>
    %98 = vector.broadcast %95 : f32 to vector<16x16xf32>
    %99 = arith.mulf %97, %98 : vector<16x16xf32>
    %100 = arith.addf %91, %99 : vector<16x16xf32>
    %c7_i32_51 = arith.constant 7 : i32
    %101 = arith.addi %0, %c7_i32_51 : i32
    %c4_i32_52 = arith.constant 4 : i32
    %102 = arith.addi %101, %c4_i32_52 : i32
    %103 = arith.index_cast %102 : i32 to index
    %104 = memref.load %arg2[%103] : memref<196xf32, #tpu.memory_space<smem>>
    %c0_53 = arith.constant 0 : index
    %c0_54 = arith.constant 0 : index
    %c1_55 = arith.constant 1 : index
    %c4_56 = arith.constant 4 : index
    %105 = vector.load %arg4[%c0_53, %c0_54, %c1_55, %c4_56] : memref<1x1x22x22xf32, #tpu.memory_space<vmem>>, vector<1x1x16x16xf32>
    %106 = vector.shape_cast %105 : vector<1x1x16x16xf32> to vector<16x16xf32>
    %107 = vector.broadcast %104 : f32 to vector<16x16xf32>
    %108 = arith.mulf %106, %107 : vector<16x16xf32>
    %109 = arith.addf %100, %108 : vector<16x16xf32>
    %c7_i32_57 = arith.constant 7 : i32
    %110 = arith.addi %0, %c7_i32_57 : i32
    %c5_i32_58 = arith.constant 5 : i32
    %111 = arith.addi %110, %c5_i32_58 : i32
    %112 = arith.index_cast %111 : i32 to index
    %113 = memref.load %arg2[%112] : memref<196xf32, #tpu.memory_space<smem>>
    %c0_59 = arith.constant 0 : index
    %c0_60 = arith.constant 0 : index
    %c1_61 = arith.constant 1 : index
    %c5_62 = arith.constant 5 : index
    %114 = vector.load %arg4[%c0_59, %c0_60, %c1_61, %c5_62] : memref<1x1x22x22xf32, #tpu.memory_space<vmem>>, vector<1x1x16x16xf32>
    %115 = vector.shape_cast %114 : vector<1x1x16x16xf32> to vector<16x16xf32>
    %116 = vector.broadcast %113 : f32 to vector<16x16xf32>
    %117 = arith.mulf %115, %116 : vector<16x16xf32>
    %118 = arith.addf %109, %117 : vector<16x16xf32>
    %c7_i32_63 = arith.constant 7 : i32
    %119 = arith.addi %0, %c7_i32_63 : i32
    %c6_i32_64 = arith.constant 6 : i32
    %120 = arith.addi %119, %c6_i32_64 : i32
    %121 = arith.index_cast %120 : i32 to index
    %122 = memref.load %arg2[%121] : memref<196xf32, #tpu.memory_space<smem>>
    %c0_65 = arith.constant 0 : index
    %c0_66 = arith.constant 0 : index
    %c1_67 = arith.constant 1 : index
    %c6_68 = arith.constant 6 : index
    %123 = vector.load %arg4[%c0_65, %c0_66, %c1_67, %c6_68] : memref<1x1x22x22xf32, #tpu.memory_space<vmem>>, vector<1x1x16x16xf32>
    %124 = vector.shape_cast %123 : vector<1x1x16x16xf32> to vector<16x16xf32>
    %125 = vector.broadcast %122 : f32 to vector<16x16xf32>
    %126 = arith.mulf %124, %125 : vector<16x16xf32>
    %127 = arith.addf %118, %126 : vector<16x16xf32>
    %c14_i32 = arith.constant 14 : i32
    %128 = arith.addi %0, %c14_i32 : i32
    %c0_i32_69 = arith.constant 0 : i32
    %129 = arith.addi %128, %c0_i32_69 : i32
    %130 = arith.index_cast %129 : i32 to index
    %131 = memref.load %arg2[%130] : memref<196xf32, #tpu.memory_space<smem>>
    %c0_70 = arith.constant 0 : index
    %c0_71 = arith.constant 0 : index
    %c2_72 = arith.constant 2 : index
    %c0_73 = arith.constant 0 : index
    %132 = vector.load %arg4[%c0_70, %c0_71, %c2_72, %c0_73] : memref<1x1x22x22xf32, #tpu.memory_space<vmem>>, vector<1x1x16x16xf32>
    %133 = vector.shape_cast %132 : vector<1x1x16x16xf32> to vector<16x16xf32>
    %134 = vector.broadcast %131 : f32 to vector<16x16xf32>
    %135 = arith.mulf %133, %134 : vector<16x16xf32>
    %136 = arith.addf %127, %135 : vector<16x16xf32>
    %c14_i32_74 = arith.constant 14 : i32
    %137 = arith.addi %0, %c14_i32_74 : i32
    %c1_i32_75 = arith.constant 1 : i32
    %138 = arith.addi %137, %c1_i32_75 : i32
    %139 = arith.index_cast %138 : i32 to index
    %140 = memref.load %arg2[%139] : memref<196xf32, #tpu.memory_space<smem>>
    %c0_76 = arith.constant 0 : index
    %c0_77 = arith.constant 0 : index
    %c2_78 = arith.constant 2 : index
    %c1_79 = arith.constant 1 : index
    %141 = vector.load %arg4[%c0_76, %c0_77, %c2_78, %c1_79] : memref<1x1x22x22xf32, #tpu.memory_space<vmem>>, vector<1x1x16x16xf32>
    %142 = vector.shape_cast %141 : vector<1x1x16x16xf32> to vector<16x16xf32>
    %143 = vector.broadcast %140 : f32 to vector<16x16xf32>
    %144 = arith.mulf %142, %143 : vector<16x16xf32>
    %145 = arith.addf %136, %144 : vector<16x16xf32>
    %c14_i32_80 = arith.constant 14 : i32
    %146 = arith.addi %0, %c14_i32_80 : i32
    %c2_i32_81 = arith.constant 2 : i32
    %147 = arith.addi %146, %c2_i32_81 : i32
    %148 = arith.index_cast %147 : i32 to index
    %149 = memref.load %arg2[%148] : memref<196xf32, #tpu.memory_space<smem>>
    %c0_82 = arith.constant 0 : index
    %c0_83 = arith.constant 0 : index
    %c2_84 = arith.constant 2 : index
    %c2_85 = arith.constant 2 : index
    %150 = vector.load %arg4[%c0_82, %c0_83, %c2_84, %c2_85] : memref<1x1x22x22xf32, #tpu.memory_space<vmem>>, vector<1x1x16x16xf32>
    %151 = vector.shape_cast %150 : vector<1x1x16x16xf32> to vector<16x16xf32>
    %152 = vector.broadcast %149 : f32 to vector<16x16xf32>
    %153 = arith.mulf %151, %152 : vector<16x16xf32>
    %154 = arith.addf %145, %153 : vector<16x16xf32>
    %c14_i32_86 = arith.constant 14 : i32
    %155 = arith.addi %0, %c14_i32_86 : i32
    %c3_i32_87 = arith.constant 3 : i32
    %156 = arith.addi %155, %c3_i32_87 : i32
    %157 = arith.index_cast %156 : i32 to index
    %158 = memref.load %arg2[%157] : memref<196xf32, #tpu.memory_space<smem>>
    %c0_88 = arith.constant 0 : index
    %c0_89 = arith.constant 0 : index
    %c2_90 = arith.constant 2 : index
    %c3_91 = arith.constant 3 : index
    %159 = vector.load %arg4[%c0_88, %c0_89, %c2_90, %c3_91] : memref<1x1x22x22xf32, #tpu.memory_space<vmem>>, vector<1x1x16x16xf32>
    %160 = vector.shape_cast %159 : vector<1x1x16x16xf32> to vector<16x16xf32>
    %161 = vector.broadcast %158 : f32 to vector<16x16xf32>
    %162 = arith.mulf %160, %161 : vector<16x16xf32>
    %163 = arith.addf %154, %162 : vector<16x16xf32>
    %c14_i32_92 = arith.constant 14 : i32
    %164 = arith.addi %0, %c14_i32_92 : i32
    %c4_i32_93 = arith.constant 4 : i32
    %165 = arith.addi %164, %c4_i32_93 : i32
    %166 = arith.index_cast %165 : i32 to index
    %167 = memref.load %arg2[%166] : memref<196xf32, #tpu.memory_space<smem>>
    %c0_94 = arith.constant 0 : index
    %c0_95 = arith.constant 0 : index
    %c2_96 = arith.constant 2 : index
    %c4_97 = arith.constant 4 : index
    %168 = vector.load %arg4[%c0_94, %c0_95, %c2_96, %c4_97] : memref<1x1x22x22xf32, #tpu.memory_space<vmem>>, vector<1x1x16x16xf32>
    %169 = vector.shape_cast %168 : vector<1x1x16x16xf32> to vector<16x16xf32>
    %170 = vector.broadcast %167 : f32 to vector<16x16xf32>
    %171 = arith.mulf %169, %170 : vector<16x16xf32>
    %172 = arith.addf %163, %171 : vector<16x16xf32>
    %c14_i32_98 = arith.constant 14 : i32
    %173 = arith.addi %0, %c14_i32_98 : i32
    %c5_i32_99 = arith.constant 5 : i32
    %174 = arith.addi %173, %c5_i32_99 : i32
    %175 = arith.index_cast %174 : i32 to index
    %176 = memref.load %arg2[%175] : memref<196xf32, #tpu.memory_space<smem>>
    %c0_100 = arith.constant 0 : index
    %c0_101 = arith.constant 0 : index
    %c2_102 = arith.constant 2 : index
    %c5_103 = arith.constant 5 : index
    %177 = vector.load %arg4[%c0_100, %c0_101, %c2_102, %c5_103] : memref<1x1x22x22xf32, #tpu.memory_space<vmem>>, vector<1x1x16x16xf32>
    %178 = vector.shape_cast %177 : vector<1x1x16x16xf32> to vector<16x16xf32>
    %179 = vector.broadcast %176 : f32 to vector<16x16xf32>
    %180 = arith.mulf %178, %179 : vector<16x16xf32>
    %181 = arith.addf %172, %180 : vector<16x16xf32>
    %c14_i32_104 = arith.constant 14 : i32
    %182 = arith.addi %0, %c14_i32_104 : i32
    %c6_i32_105 = arith.constant 6 : i32
    %183 = arith.addi %182, %c6_i32_105 : i32
    %184 = arith.index_cast %183 : i32 to index
    %185 = memref.load %arg2[%184] : memref<196xf32, #tpu.memory_space<smem>>
    %c0_106 = arith.constant 0 : index
    %c0_107 = arith.constant 0 : index
    %c2_108 = arith.constant 2 : index
    %c6_109 = arith.constant 6 : index
    %186 = vector.load %arg4[%c0_106, %c0_107, %c2_108, %c6_109] : memref<1x1x22x22xf32, #tpu.memory_space<vmem>>, vector<1x1x16x16xf32>
    %187 = vector.shape_cast %186 : vector<1x1x16x16xf32> to vector<16x16xf32>
    %188 = vector.broadcast %185 : f32 to vector<16x16xf32>
    %189 = arith.mulf %187, %188 : vector<16x16xf32>
    %190 = arith.addf %181, %189 : vector<16x16xf32>
    %c21_i32 = arith.constant 21 : i32
    %191 = arith.addi %0, %c21_i32 : i32
    %c0_i32_110 = arith.constant 0 : i32
    %192 = arith.addi %191, %c0_i32_110 : i32
    %193 = arith.index_cast %192 : i32 to index
    %194 = memref.load %arg2[%193] : memref<196xf32, #tpu.memory_space<smem>>
    %c0_111 = arith.constant 0 : index
    %c0_112 = arith.constant 0 : index
    %c3_113 = arith.constant 3 : index
    %c0_114 = arith.constant 0 : index
    %195 = vector.load %arg4[%c0_111, %c0_112, %c3_113, %c0_114] : memref<1x1x22x22xf32, #tpu.memory_space<vmem>>, vector<1x1x16x16xf32>
    %196 = vector.shape_cast %195 : vector<1x1x16x16xf32> to vector<16x16xf32>
    %197 = vector.broadcast %194 : f32 to vector<16x16xf32>
    %198 = arith.mulf %196, %197 : vector<16x16xf32>
    %199 = arith.addf %190, %198 : vector<16x16xf32>
    %c21_i32_115 = arith.constant 21 : i32
    %200 = arith.addi %0, %c21_i32_115 : i32
    %c1_i32_116 = arith.constant 1 : i32
    %201 = arith.addi %200, %c1_i32_116 : i32
    %202 = arith.index_cast %201 : i32 to index
    %203 = memref.load %arg2[%202] : memref<196xf32, #tpu.memory_space<smem>>
    %c0_117 = arith.constant 0 : index
    %c0_118 = arith.constant 0 : index
    %c3_119 = arith.constant 3 : index
    %c1_120 = arith.constant 1 : index
    %204 = vector.load %arg4[%c0_117, %c0_118, %c3_119, %c1_120] : memref<1x1x22x22xf32, #tpu.memory_space<vmem>>, vector<1x1x16x16xf32>
    %205 = vector.shape_cast %204 : vector<1x1x16x16xf32> to vector<16x16xf32>
    %206 = vector.broadcast %203 : f32 to vector<16x16xf32>
    %207 = arith.mulf %205, %206 : vector<16x16xf32>
    %208 = arith.addf %199, %207 : vector<16x16xf32>
    %c21_i32_121 = arith.constant 21 : i32
    %209 = arith.addi %0, %c21_i32_121 : i32
    %c2_i32_122 = arith.constant 2 : i32
    %210 = arith.addi %209, %c2_i32_122 : i32
    %211 = arith.index_cast %210 : i32 to index
    %212 = memref.load %arg2[%211] : memref<196xf32, #tpu.memory_space<smem>>
    %c0_123 = arith.constant 0 : index
    %c0_124 = arith.constant 0 : index
    %c3_125 = arith.constant 3 : index
    %c2_126 = arith.constant 2 : index
    %213 = vector.load %arg4[%c0_123, %c0_124, %c3_125, %c2_126] : memref<1x1x22x22xf32, #tpu.memory_space<vmem>>, vector<1x1x16x16xf32>
    %214 = vector.shape_cast %213 : vector<1x1x16x16xf32> to vector<16x16xf32>
    %215 = vector.broadcast %212 : f32 to vector<16x16xf32>
    %216 = arith.mulf %214, %215 : vector<16x16xf32>
    %217 = arith.addf %208, %216 : vector<16x16xf32>
    %c21_i32_127 = arith.constant 21 : i32
    %218 = arith.addi %0, %c21_i32_127 : i32
    %c3_i32_128 = arith.constant 3 : i32
    %219 = arith.addi %218, %c3_i32_128 : i32
    %220 = arith.index_cast %219 : i32 to index
    %221 = memref.load %arg2[%220] : memref<196xf32, #tpu.memory_space<smem>>
    %c0_129 = arith.constant 0 : index
    %c0_130 = arith.constant 0 : index
    %c3_131 = arith.constant 3 : index
    %c3_132 = arith.constant 3 : index
    %222 = vector.load %arg4[%c0_129, %c0_130, %c3_131, %c3_132] : memref<1x1x22x22xf32, #tpu.memory_space<vmem>>, vector<1x1x16x16xf32>
    %223 = vector.shape_cast %222 : vector<1x1x16x16xf32> to vector<16x16xf32>
    %224 = vector.broadcast %221 : f32 to vector<16x16xf32>
    %225 = arith.mulf %223, %224 : vector<16x16xf32>
    %226 = arith.addf %217, %225 : vector<16x16xf32>
    %c21_i32_133 = arith.constant 21 : i32
    %227 = arith.addi %0, %c21_i32_133 : i32
    %c4_i32_134 = arith.constant 4 : i32
    %228 = arith.addi %227, %c4_i32_134 : i32
    %229 = arith.index_cast %228 : i32 to index
    %230 = memref.load %arg2[%229] : memref<196xf32, #tpu.memory_space<smem>>
    %c0_135 = arith.constant 0 : index
    %c0_136 = arith.constant 0 : index
    %c3_137 = arith.constant 3 : index
    %c4_138 = arith.constant 4 : index
    %231 = vector.load %arg4[%c0_135, %c0_136, %c3_137, %c4_138] : memref<1x1x22x22xf32, #tpu.memory_space<vmem>>, vector<1x1x16x16xf32>
    %232 = vector.shape_cast %231 : vector<1x1x16x16xf32> to vector<16x16xf32>
    %233 = vector.broadcast %230 : f32 to vector<16x16xf32>
    %234 = arith.mulf %232, %233 : vector<16x16xf32>
    %235 = arith.addf %226, %234 : vector<16x16xf32>
    %c21_i32_139 = arith.constant 21 : i32
    %236 = arith.addi %0, %c21_i32_139 : i32
    %c5_i32_140 = arith.constant 5 : i32
    %237 = arith.addi %236, %c5_i32_140 : i32
    %238 = arith.index_cast %237 : i32 to index
    %239 = memref.load %arg2[%238] : memref<196xf32, #tpu.memory_space<smem>>
    %c0_141 = arith.constant 0 : index
    %c0_142 = arith.constant 0 : index
    %c3_143 = arith.constant 3 : index
    %c5_144 = arith.constant 5 : index
    %240 = vector.load %arg4[%c0_141, %c0_142, %c3_143, %c5_144] : memref<1x1x22x22xf32, #tpu.memory_space<vmem>>, vector<1x1x16x16xf32>
    %241 = vector.shape_cast %240 : vector<1x1x16x16xf32> to vector<16x16xf32>
    %242 = vector.broadcast %239 : f32 to vector<16x16xf32>
    %243 = arith.mulf %241, %242 : vector<16x16xf32>
    %244 = arith.addf %235, %243 : vector<16x16xf32>
    %c21_i32_145 = arith.constant 21 : i32
    %245 = arith.addi %0, %c21_i32_145 : i32
    %c6_i32_146 = arith.constant 6 : i32
    %246 = arith.addi %245, %c6_i32_146 : i32
    %247 = arith.index_cast %246 : i32 to index
    %248 = memref.load %arg2[%247] : memref<196xf32, #tpu.memory_space<smem>>
    %c0_147 = arith.constant 0 : index
    %c0_148 = arith.constant 0 : index
    %c3_149 = arith.constant 3 : index
    %c6_150 = arith.constant 6 : index
    %249 = vector.load %arg4[%c0_147, %c0_148, %c3_149, %c6_150] : memref<1x1x22x22xf32, #tpu.memory_space<vmem>>, vector<1x1x16x16xf32>
    %250 = vector.shape_cast %249 : vector<1x1x16x16xf32> to vector<16x16xf32>
    %251 = vector.broadcast %248 : f32 to vector<16x16xf32>
    %252 = arith.mulf %250, %251 : vector<16x16xf32>
    %253 = arith.addf %244, %252 : vector<16x16xf32>
    %c28_i32 = arith.constant 28 : i32
    %254 = arith.addi %0, %c28_i32 : i32
    %c0_i32_151 = arith.constant 0 : i32
    %255 = arith.addi %254, %c0_i32_151 : i32
    %256 = arith.index_cast %255 : i32 to index
    %257 = memref.load %arg2[%256] : memref<196xf32, #tpu.memory_space<smem>>
    %c0_152 = arith.constant 0 : index
    %c0_153 = arith.constant 0 : index
    %c4_154 = arith.constant 4 : index
    %c0_155 = arith.constant 0 : index
    %258 = vector.load %arg4[%c0_152, %c0_153, %c4_154, %c0_155] : memref<1x1x22x22xf32, #tpu.memory_space<vmem>>, vector<1x1x16x16xf32>
    %259 = vector.shape_cast %258 : vector<1x1x16x16xf32> to vector<16x16xf32>
    %260 = vector.broadcast %257 : f32 to vector<16x16xf32>
    %261 = arith.mulf %259, %260 : vector<16x16xf32>
    %262 = arith.addf %253, %261 : vector<16x16xf32>
    %c28_i32_156 = arith.constant 28 : i32
    %263 = arith.addi %0, %c28_i32_156 : i32
    %c1_i32_157 = arith.constant 1 : i32
    %264 = arith.addi %263, %c1_i32_157 : i32
    %265 = arith.index_cast %264 : i32 to index
    %266 = memref.load %arg2[%265] : memref<196xf32, #tpu.memory_space<smem>>
    %c0_158 = arith.constant 0 : index
    %c0_159 = arith.constant 0 : index
    %c4_160 = arith.constant 4 : index
    %c1_161 = arith.constant 1 : index
    %267 = vector.load %arg4[%c0_158, %c0_159, %c4_160, %c1_161] : memref<1x1x22x22xf32, #tpu.memory_space<vmem>>, vector<1x1x16x16xf32>
    %268 = vector.shape_cast %267 : vector<1x1x16x16xf32> to vector<16x16xf32>
    %269 = vector.broadcast %266 : f32 to vector<16x16xf32>
    %270 = arith.mulf %268, %269 : vector<16x16xf32>
    %271 = arith.addf %262, %270 : vector<16x16xf32>
    %c28_i32_162 = arith.constant 28 : i32
    %272 = arith.addi %0, %c28_i32_162 : i32
    %c2_i32_163 = arith.constant 2 : i32
    %273 = arith.addi %272, %c2_i32_163 : i32
    %274 = arith.index_cast %273 : i32 to index
    %275 = memref.load %arg2[%274] : memref<196xf32, #tpu.memory_space<smem>>
    %c0_164 = arith.constant 0 : index
    %c0_165 = arith.constant 0 : index
    %c4_166 = arith.constant 4 : index
    %c2_167 = arith.constant 2 : index
    %276 = vector.load %arg4[%c0_164, %c0_165, %c4_166, %c2_167] : memref<1x1x22x22xf32, #tpu.memory_space<vmem>>, vector<1x1x16x16xf32>
    %277 = vector.shape_cast %276 : vector<1x1x16x16xf32> to vector<16x16xf32>
    %278 = vector.broadcast %275 : f32 to vector<16x16xf32>
    %279 = arith.mulf %277, %278 : vector<16x16xf32>
    %280 = arith.addf %271, %279 : vector<16x16xf32>
    %c28_i32_168 = arith.constant 28 : i32
    %281 = arith.addi %0, %c28_i32_168 : i32
    %c3_i32_169 = arith.constant 3 : i32
    %282 = arith.addi %281, %c3_i32_169 : i32
    %283 = arith.index_cast %282 : i32 to index
    %284 = memref.load %arg2[%283] : memref<196xf32, #tpu.memory_space<smem>>
    %c0_170 = arith.constant 0 : index
    %c0_171 = arith.constant 0 : index
    %c4_172 = arith.constant 4 : index
    %c3_173 = arith.constant 3 : index
    %285 = vector.load %arg4[%c0_170, %c0_171, %c4_172, %c3_173] : memref<1x1x22x22xf32, #tpu.memory_space<vmem>>, vector<1x1x16x16xf32>
    %286 = vector.shape_cast %285 : vector<1x1x16x16xf32> to vector<16x16xf32>
    %287 = vector.broadcast %284 : f32 to vector<16x16xf32>
    %288 = arith.mulf %286, %287 : vector<16x16xf32>
    %289 = arith.addf %280, %288 : vector<16x16xf32>
    %c28_i32_174 = arith.constant 28 : i32
    %290 = arith.addi %0, %c28_i32_174 : i32
    %c4_i32_175 = arith.constant 4 : i32
    %291 = arith.addi %290, %c4_i32_175 : i32
    %292 = arith.index_cast %291 : i32 to index
    %293 = memref.load %arg2[%292] : memref<196xf32, #tpu.memory_space<smem>>
    %c0_176 = arith.constant 0 : index
    %c0_177 = arith.constant 0 : index
    %c4_178 = arith.constant 4 : index
    %c4_179 = arith.constant 4 : index
    %294 = vector.load %arg4[%c0_176, %c0_177, %c4_178, %c4_179] : memref<1x1x22x22xf32, #tpu.memory_space<vmem>>, vector<1x1x16x16xf32>
    %295 = vector.shape_cast %294 : vector<1x1x16x16xf32> to vector<16x16xf32>
    %296 = vector.broadcast %293 : f32 to vector<16x16xf32>
    %297 = arith.mulf %295, %296 : vector<16x16xf32>
    %298 = arith.addf %289, %297 : vector<16x16xf32>
    %c28_i32_180 = arith.constant 28 : i32
    %299 = arith.addi %0, %c28_i32_180 : i32
    %c5_i32_181 = arith.constant 5 : i32
    %300 = arith.addi %299, %c5_i32_181 : i32
    %301 = arith.index_cast %300 : i32 to index
    %302 = memref.load %arg2[%301] : memref<196xf32, #tpu.memory_space<smem>>
    %c0_182 = arith.constant 0 : index
    %c0_183 = arith.constant 0 : index
    %c4_184 = arith.constant 4 : index
    %c5_185 = arith.constant 5 : index
    %303 = vector.load %arg4[%c0_182, %c0_183, %c4_184, %c5_185] : memref<1x1x22x22xf32, #tpu.memory_space<vmem>>, vector<1x1x16x16xf32>
    %304 = vector.shape_cast %303 : vector<1x1x16x16xf32> to vector<16x16xf32>
    %305 = vector.broadcast %302 : f32 to vector<16x16xf32>
    %306 = arith.mulf %304, %305 : vector<16x16xf32>
    %307 = arith.addf %298, %306 : vector<16x16xf32>
    %c28_i32_186 = arith.constant 28 : i32
    %308 = arith.addi %0, %c28_i32_186 : i32
    %c6_i32_187 = arith.constant 6 : i32
    %309 = arith.addi %308, %c6_i32_187 : i32
    %310 = arith.index_cast %309 : i32 to index
    %311 = memref.load %arg2[%310] : memref<196xf32, #tpu.memory_space<smem>>
    %c0_188 = arith.constant 0 : index
    %c0_189 = arith.constant 0 : index
    %c4_190 = arith.constant 4 : index
    %c6_191 = arith.constant 6 : index
    %312 = vector.load %arg4[%c0_188, %c0_189, %c4_190, %c6_191] : memref<1x1x22x22xf32, #tpu.memory_space<vmem>>, vector<1x1x16x16xf32>
    %313 = vector.shape_cast %312 : vector<1x1x16x16xf32> to vector<16x16xf32>
    %314 = vector.broadcast %311 : f32 to vector<16x16xf32>
    %315 = arith.mulf %313, %314 : vector<16x16xf32>
    %316 = arith.addf %307, %315 : vector<16x16xf32>
    %c35_i32 = arith.constant 35 : i32
    %317 = arith.addi %0, %c35_i32 : i32
    %c0_i32_192 = arith.constant 0 : i32
    %318 = arith.addi %317, %c0_i32_192 : i32
    %319 = arith.index_cast %318 : i32 to index
    %320 = memref.load %arg2[%319] : memref<196xf32, #tpu.memory_space<smem>>
    %c0_193 = arith.constant 0 : index
    %c0_194 = arith.constant 0 : index
    %c5_195 = arith.constant 5 : index
    %c0_196 = arith.constant 0 : index
    %321 = vector.load %arg4[%c0_193, %c0_194, %c5_195, %c0_196] : memref<1x1x22x22xf32, #tpu.memory_space<vmem>>, vector<1x1x16x16xf32>
    %322 = vector.shape_cast %321 : vector<1x1x16x16xf32> to vector<16x16xf32>
    %323 = vector.broadcast %320 : f32 to vector<16x16xf32>
    %324 = arith.mulf %322, %323 : vector<16x16xf32>
    %325 = arith.addf %316, %324 : vector<16x16xf32>
    %c35_i32_197 = arith.constant 35 : i32
    %326 = arith.addi %0, %c35_i32_197 : i32
    %c1_i32_198 = arith.constant 1 : i32
    %327 = arith.addi %326, %c1_i32_198 : i32
    %328 = arith.index_cast %327 : i32 to index
    %329 = memref.load %arg2[%328] : memref<196xf32, #tpu.memory_space<smem>>
    %c0_199 = arith.constant 0 : index
    %c0_200 = arith.constant 0 : index
    %c5_201 = arith.constant 5 : index
    %c1_202 = arith.constant 1 : index
    %330 = vector.load %arg4[%c0_199, %c0_200, %c5_201, %c1_202] : memref<1x1x22x22xf32, #tpu.memory_space<vmem>>, vector<1x1x16x16xf32>
    %331 = vector.shape_cast %330 : vector<1x1x16x16xf32> to vector<16x16xf32>
    %332 = vector.broadcast %329 : f32 to vector<16x16xf32>
    %333 = arith.mulf %331, %332 : vector<16x16xf32>
    %334 = arith.addf %325, %333 : vector<16x16xf32>
    %c35_i32_203 = arith.constant 35 : i32
    %335 = arith.addi %0, %c35_i32_203 : i32
    %c2_i32_204 = arith.constant 2 : i32
    %336 = arith.addi %335, %c2_i32_204 : i32
    %337 = arith.index_cast %336 : i32 to index
    %338 = memref.load %arg2[%337] : memref<196xf32, #tpu.memory_space<smem>>
    %c0_205 = arith.constant 0 : index
    %c0_206 = arith.constant 0 : index
    %c5_207 = arith.constant 5 : index
    %c2_208 = arith.constant 2 : index
    %339 = vector.load %arg4[%c0_205, %c0_206, %c5_207, %c2_208] : memref<1x1x22x22xf32, #tpu.memory_space<vmem>>, vector<1x1x16x16xf32>
    %340 = vector.shape_cast %339 : vector<1x1x16x16xf32> to vector<16x16xf32>
    %341 = vector.broadcast %338 : f32 to vector<16x16xf32>
    %342 = arith.mulf %340, %341 : vector<16x16xf32>
    %343 = arith.addf %334, %342 : vector<16x16xf32>
    %c35_i32_209 = arith.constant 35 : i32
    %344 = arith.addi %0, %c35_i32_209 : i32
    %c3_i32_210 = arith.constant 3 : i32
    %345 = arith.addi %344, %c3_i32_210 : i32
    %346 = arith.index_cast %345 : i32 to index
    %347 = memref.load %arg2[%346] : memref<196xf32, #tpu.memory_space<smem>>
    %c0_211 = arith.constant 0 : index
    %c0_212 = arith.constant 0 : index
    %c5_213 = arith.constant 5 : index
    %c3_214 = arith.constant 3 : index
    %348 = vector.load %arg4[%c0_211, %c0_212, %c5_213, %c3_214] : memref<1x1x22x22xf32, #tpu.memory_space<vmem>>, vector<1x1x16x16xf32>
    %349 = vector.shape_cast %348 : vector<1x1x16x16xf32> to vector<16x16xf32>
    %350 = vector.broadcast %347 : f32 to vector<16x16xf32>
    %351 = arith.mulf %349, %350 : vector<16x16xf32>
    %352 = arith.addf %343, %351 : vector<16x16xf32>
    %c35_i32_215 = arith.constant 35 : i32
    %353 = arith.addi %0, %c35_i32_215 : i32
    %c4_i32_216 = arith.constant 4 : i32
    %354 = arith.addi %353, %c4_i32_216 : i32
    %355 = arith.index_cast %354 : i32 to index
    %356 = memref.load %arg2[%355] : memref<196xf32, #tpu.memory_space<smem>>
    %c0_217 = arith.constant 0 : index
    %c0_218 = arith.constant 0 : index
    %c5_219 = arith.constant 5 : index
    %c4_220 = arith.constant 4 : index
    %357 = vector.load %arg4[%c0_217, %c0_218, %c5_219, %c4_220] : memref<1x1x22x22xf32, #tpu.memory_space<vmem>>, vector<1x1x16x16xf32>
    %358 = vector.shape_cast %357 : vector<1x1x16x16xf32> to vector<16x16xf32>
    %359 = vector.broadcast %356 : f32 to vector<16x16xf32>
    %360 = arith.mulf %358, %359 : vector<16x16xf32>
    %361 = arith.addf %352, %360 : vector<16x16xf32>
    %c35_i32_221 = arith.constant 35 : i32
    %362 = arith.addi %0, %c35_i32_221 : i32
    %c5_i32_222 = arith.constant 5 : i32
    %363 = arith.addi %362, %c5_i32_222 : i32
    %364 = arith.index_cast %363 : i32 to index
    %365 = memref.load %arg2[%364] : memref<196xf32, #tpu.memory_space<smem>>
    %c0_223 = arith.constant 0 : index
    %c0_224 = arith.constant 0 : index
    %c5_225 = arith.constant 5 : index
    %c5_226 = arith.constant 5 : index
    %366 = vector.load %arg4[%c0_223, %c0_224, %c5_225, %c5_226] : memref<1x1x22x22xf32, #tpu.memory_space<vmem>>, vector<1x1x16x16xf32>
    %367 = vector.shape_cast %366 : vector<1x1x16x16xf32> to vector<16x16xf32>
    %368 = vector.broadcast %365 : f32 to vector<16x16xf32>
    %369 = arith.mulf %367, %368 : vector<16x16xf32>
    %370 = arith.addf %361, %369 : vector<16x16xf32>
    %c35_i32_227 = arith.constant 35 : i32
    %371 = arith.addi %0, %c35_i32_227 : i32
    %c6_i32_228 = arith.constant 6 : i32
    %372 = arith.addi %371, %c6_i32_228 : i32
    %373 = arith.index_cast %372 : i32 to index
    %374 = memref.load %arg2[%373] : memref<196xf32, #tpu.memory_space<smem>>
    %c0_229 = arith.constant 0 : index
    %c0_230 = arith.constant 0 : index
    %c5_231 = arith.constant 5 : index
    %c6_232 = arith.constant 6 : index
    %375 = vector.load %arg4[%c0_229, %c0_230, %c5_231, %c6_232] : memref<1x1x22x22xf32, #tpu.memory_space<vmem>>, vector<1x1x16x16xf32>
    %376 = vector.shape_cast %375 : vector<1x1x16x16xf32> to vector<16x16xf32>
    %377 = vector.broadcast %374 : f32 to vector<16x16xf32>
    %378 = arith.mulf %376, %377 : vector<16x16xf32>
    %379 = arith.addf %370, %378 : vector<16x16xf32>
    %c42_i32 = arith.constant 42 : i32
    %380 = arith.addi %0, %c42_i32 : i32
    %c0_i32_233 = arith.constant 0 : i32
    %381 = arith.addi %380, %c0_i32_233 : i32
    %382 = arith.index_cast %381 : i32 to index
    %383 = memref.load %arg2[%382] : memref<196xf32, #tpu.memory_space<smem>>
    %c0_234 = arith.constant 0 : index
    %c0_235 = arith.constant 0 : index
    %c6_236 = arith.constant 6 : index
    %c0_237 = arith.constant 0 : index
    %384 = vector.load %arg4[%c0_234, %c0_235, %c6_236, %c0_237] : memref<1x1x22x22xf32, #tpu.memory_space<vmem>>, vector<1x1x16x16xf32>
    %385 = vector.shape_cast %384 : vector<1x1x16x16xf32> to vector<16x16xf32>
    %386 = vector.broadcast %383 : f32 to vector<16x16xf32>
    %387 = arith.mulf %385, %386 : vector<16x16xf32>
    %388 = arith.addf %379, %387 : vector<16x16xf32>
    %c42_i32_238 = arith.constant 42 : i32
    %389 = arith.addi %0, %c42_i32_238 : i32
    %c1_i32_239 = arith.constant 1 : i32
    %390 = arith.addi %389, %c1_i32_239 : i32
    %391 = arith.index_cast %390 : i32 to index
    %392 = memref.load %arg2[%391] : memref<196xf32, #tpu.memory_space<smem>>
    %c0_240 = arith.constant 0 : index
    %c0_241 = arith.constant 0 : index
    %c6_242 = arith.constant 6 : index
    %c1_243 = arith.constant 1 : index
    %393 = vector.load %arg4[%c0_240, %c0_241, %c6_242, %c1_243] : memref<1x1x22x22xf32, #tpu.memory_space<vmem>>, vector<1x1x16x16xf32>
    %394 = vector.shape_cast %393 : vector<1x1x16x16xf32> to vector<16x16xf32>
    %395 = vector.broadcast %392 : f32 to vector<16x16xf32>
    %396 = arith.mulf %394, %395 : vector<16x16xf32>
    %397 = arith.addf %388, %396 : vector<16x16xf32>
    %c42_i32_244 = arith.constant 42 : i32
    %398 = arith.addi %0, %c42_i32_244 : i32
    %c2_i32_245 = arith.constant 2 : i32
    %399 = arith.addi %398, %c2_i32_245 : i32
    %400 = arith.index_cast %399 : i32 to index
    %401 = memref.load %arg2[%400] : memref<196xf32, #tpu.memory_space<smem>>
    %c0_246 = arith.constant 0 : index
    %c0_247 = arith.constant 0 : index
    %c6_248 = arith.constant 6 : index
    %c2_249 = arith.constant 2 : index
    %402 = vector.load %arg4[%c0_246, %c0_247, %c6_248, %c2_249] : memref<1x1x22x22xf32, #tpu.memory_space<vmem>>, vector<1x1x16x16xf32>
    %403 = vector.shape_cast %402 : vector<1x1x16x16xf32> to vector<16x16xf32>
    %404 = vector.broadcast %401 : f32 to vector<16x16xf32>
    %405 = arith.mulf %403, %404 : vector<16x16xf32>
    %406 = arith.addf %397, %405 : vector<16x16xf32>
    %c42_i32_250 = arith.constant 42 : i32
    %407 = arith.addi %0, %c42_i32_250 : i32
    %c3_i32_251 = arith.constant 3 : i32
    %408 = arith.addi %407, %c3_i32_251 : i32
    %409 = arith.index_cast %408 : i32 to index
    %410 = memref.load %arg2[%409] : memref<196xf32, #tpu.memory_space<smem>>
    %c0_252 = arith.constant 0 : index
    %c0_253 = arith.constant 0 : index
    %c6_254 = arith.constant 6 : index
    %c3_255 = arith.constant 3 : index
    %411 = vector.load %arg4[%c0_252, %c0_253, %c6_254, %c3_255] : memref<1x1x22x22xf32, #tpu.memory_space<vmem>>, vector<1x1x16x16xf32>
    %412 = vector.shape_cast %411 : vector<1x1x16x16xf32> to vector<16x16xf32>
    %413 = vector.broadcast %410 : f32 to vector<16x16xf32>
    %414 = arith.mulf %412, %413 : vector<16x16xf32>
    %415 = arith.addf %406, %414 : vector<16x16xf32>
    %c42_i32_256 = arith.constant 42 : i32
    %416 = arith.addi %0, %c42_i32_256 : i32
    %c4_i32_257 = arith.constant 4 : i32
    %417 = arith.addi %416, %c4_i32_257 : i32
    %418 = arith.index_cast %417 : i32 to index
    %419 = memref.load %arg2[%418] : memref<196xf32, #tpu.memory_space<smem>>
    %c0_258 = arith.constant 0 : index
    %c0_259 = arith.constant 0 : index
    %c6_260 = arith.constant 6 : index
    %c4_261 = arith.constant 4 : index
    %420 = vector.load %arg4[%c0_258, %c0_259, %c6_260, %c4_261] : memref<1x1x22x22xf32, #tpu.memory_space<vmem>>, vector<1x1x16x16xf32>
    %421 = vector.shape_cast %420 : vector<1x1x16x16xf32> to vector<16x16xf32>
    %422 = vector.broadcast %419 : f32 to vector<16x16xf32>
    %423 = arith.mulf %421, %422 : vector<16x16xf32>
    %424 = arith.addf %415, %423 : vector<16x16xf32>
    %c42_i32_262 = arith.constant 42 : i32
    %425 = arith.addi %0, %c42_i32_262 : i32
    %c5_i32_263 = arith.constant 5 : i32
    %426 = arith.addi %425, %c5_i32_263 : i32
    %427 = arith.index_cast %426 : i32 to index
    %428 = memref.load %arg2[%427] : memref<196xf32, #tpu.memory_space<smem>>
    %c0_264 = arith.constant 0 : index
    %c0_265 = arith.constant 0 : index
    %c6_266 = arith.constant 6 : index
    %c5_267 = arith.constant 5 : index
    %429 = vector.load %arg4[%c0_264, %c0_265, %c6_266, %c5_267] : memref<1x1x22x22xf32, #tpu.memory_space<vmem>>, vector<1x1x16x16xf32>
    %430 = vector.shape_cast %429 : vector<1x1x16x16xf32> to vector<16x16xf32>
    %431 = vector.broadcast %428 : f32 to vector<16x16xf32>
    %432 = arith.mulf %430, %431 : vector<16x16xf32>
    %433 = arith.addf %424, %432 : vector<16x16xf32>
    %c42_i32_268 = arith.constant 42 : i32
    %434 = arith.addi %0, %c42_i32_268 : i32
    %c6_i32_269 = arith.constant 6 : i32
    %435 = arith.addi %434, %c6_i32_269 : i32
    %436 = arith.index_cast %435 : i32 to index
    %437 = memref.load %arg2[%436] : memref<196xf32, #tpu.memory_space<smem>>
    %c0_270 = arith.constant 0 : index
    %c0_271 = arith.constant 0 : index
    %c6_272 = arith.constant 6 : index
    %c6_273 = arith.constant 6 : index
    %438 = vector.load %arg4[%c0_270, %c0_271, %c6_272, %c6_273] : memref<1x1x22x22xf32, #tpu.memory_space<vmem>>, vector<1x1x16x16xf32>
    %439 = vector.shape_cast %438 : vector<1x1x16x16xf32> to vector<16x16xf32>
    %440 = vector.broadcast %437 : f32 to vector<16x16xf32>
    %441 = arith.mulf %439, %440 : vector<16x16xf32>
    %442 = arith.addf %433, %441 : vector<16x16xf32>
    %443 = arith.index_cast %arg1 : i32 to index
    %444 = memref.load %arg3[%443] : memref<4xf32, #tpu.memory_space<smem>>
    %445 = vector.broadcast %444 : f32 to vector<16x16xf32>
    %446 = arith.addf %442, %445 : vector<16x16xf32>
    %c0_274 = arith.constant 0 : index
    %c0_275 = arith.constant 0 : index
    %c0_276 = arith.constant 0 : index
    %c0_277 = arith.constant 0 : index
    %447 = vector.load %arg5[%c0_274, %c0_275, %c0_276, %c0_277] : memref<1x1x16x16xf32, #tpu.memory_space<vmem>>, vector<1x1x16x16xf32>
    %448 = vector.shape_cast %447 : vector<1x1x16x16xf32> to vector<16x16xf32>
    %449 = vector.shape_cast %446 : vector<16x16xf32> to vector<1x1x16x16xf32>
    tpu.vector_store %arg5[%c0_274, %c0_275, %c0_276, %c0_277], %449 {strides = array<i32>} : memref<1x1x16x16xf32, #tpu.memory_space<vmem>>, vector<1x1x16x16xf32>,
    return
  }
  func.func @transform_0(%arg0: i32, %arg1: i32) -> i32 {
    %c0_i32 = arith.constant 0 : i32
    %c0_i32_0 = arith.constant 0 : i32
    return %c0_i32 : i32
  }
  func.func @transform_1(%arg0: i32, %arg1: i32) -> i32 {
    %c0_i32 = arith.constant 0 : i32
    %c0_i32_0 = arith.constant 0 : i32
    return %c0_i32 : i32
  }
  func.func @transform_2(%arg0: i32, %arg1: i32) -> (i32, i32, i32, i32) {
    %c0_i32 = arith.constant 0 : i32
    %c0_i32_0 = arith.constant 0 : i32
    %c0_i32_1 = arith.constant 0 : i32
    return %arg0, %arg1, %c0_i32, %c0_i32_0 : i32, i32, i32, i32
  }
  func.func @transform_3(%arg0: i32, %arg1: i32) -> (i32, i32, i32, i32) {
    %c0_i32 = arith.constant 0 : i32
    %c0_i32_0 = arith.constant 0 : i32
    %c0_i32_1 = arith.constant 0 : i32
    return %arg0, %arg1, %c0_i32, %c0_i32_0 : i32, i32, i32, i32
  }
}

</mosaic_0001>

<bundles_post_ra>
// kernel: tpu_custom_call.1
= control target key start
LH: loop header
LB: loop body
LE: loop exit
PB: predicated region body
PF: predicated region fallthrough
CT: control target
= control target key end

     0   :  { %s1837_s0 = inlined_call_operand.vmem [shape: f32[196], index: 0, kind: input, shape index: {}]   ;;  %s1838_s1 = inlined_call_operand.vmem [shape: f32[4], index: 1, kind: input, shape index: {}]   ;;  %s1839_s2 = inlined_call_operand.vmem [shape: f32[2,4,22,22], index: 2, kind: input, shape index: {}]   ;;  %s1840_s3 = inlined_call_operand.hbm [shape: f32[2,4,16,16], index: 3, kind: output, shape index: {}]  }
   0x1   :  { %1845 = sst [smem:[#allocation11_spill]] %s1837_s0 }
   0x2   :  { %1846 = sst [smem:[#allocation12_spill]] %s1838_s1 }
   0x3   :  { %8 = vsyncpa [#allocation4], 0 }
   0x4   :  { %9 = vsyncpa [#allocation6], 0 }
   0x5   :  { %10 = vsyncpa [#allocation3], 0 }
   0x6   :  { %12 = vsyncpa [#allocation3 + $0x1], 0  ;;  %s1329_s12 = smov 0   ;;  %s1331_s13 = smov 0  }
   0x7   :  { %s1333_s14 = smov 0   ;;  %s1335_s15 = smov 0  }
   0x8   :  { %s1337_s16 = smov 0   ;;  %s1339_s17 = smov 0  }
   0x9   :  { %s1341_s18 = smov 0   ;;  %s1343_s19 = smov 0  }
   0xa LB: > { %s1047_s20 = sadd.s32 4294967295, %s1296_s19   ;;  %s1048_s21 = sadd.s32 4294967294, %s1296_s19   ;;  %s1296_s19 = sphi %s1343_s19, %s18_s19   ;;  %s1292_s18 = sphi %s1341_s18, %s1864_s18   ;;  %s1288_s17 = sphi %s1339_s17, %s1863_s17   ;;  %s1284_s16 = sphi %s1337_s16, %s1862_s16   ;;  %s1280_s15 = sphi %s1335_s15, %s1861_s15   ;;  %s1276_s14 = sphi %s1333_s14, %s1860_s14   ;;  %s1272_s13 = sphi %s1331_s13, %s1859_s13   ;;  %s1268_s12 = sphi %s1329_s12, %s1858_s12  }
   0xb   : > { %s27_s22 = sadd.s32 1, %s1288_s17  ;;  %s30_s23 = sadd.s32 1, %s1292_s18 }
   0xc   : > { %p28_p0 = scmp.ge.s32.totalorder %s27_s22, 4  ;;  %s109_s24 = sadd.s32 1, %s1276_s14 }
   0xd   : > { %p119_p1 = scmp.ne.s32.totalorder %s1276_s14, %s1272_s13  ;;  %p120_p2 = scmp.eq.s32.totalorder %s1047_s20, 7 }
   0xe   : > { %s1866_s22 = smov (%p28_p0, %s27_s22), 0  ;;  %s1868_s23 = smov (!%p28_p0, %s30_s23), %s1292_s18 }
   0xf   : > { %s105_s25 = ssub.s32 %s1288_s17, %s1866_s22  ;;  %p1381_p3 = por %p120_p2, %p119_p1 }
  0x10   : > { %p32_p4 = scmp.ge.s32.totalorder %s1868_s23, 2  ;;  %p125_p5 = scmp.ne.s32.totalorder %s1272_s13, %s1268_s12 }
  0x11   : > { %s1847_s26 = scalar_select %p1381_p3, 1, 0 }
  0x12   : > { %p126_p6 = scmp.eq.s32.totalorder %s1048_s21, 7  ;;  %p1049_p7 = scmp.ge.s32.totalorder %s1296_s19, 1 }
  0x13   : > { %s1870_s23 = smov (%p32_p4, %s1868_s23), 0  ;;  %p133_p9 = scmp.lt.s32.totalorder %s1296_s19, 9 }
  0x14   : > { %p1390_p8 = por %p126_p6, %p125_p5  ;;  %s104_s28 = ssub.s32 %s1292_s18, %s1870_s23 }
  0x15   : > { %s106_s29 = sor.u32 %s105_s25, %s104_s28  ;;  %p1397_p10 = pnand %p1049_p7, %p133_p9 }
  0x16   : > { %s1848_s27 = scalar_select %p1390_p8, 1, 0 }
  0x17   : > { %s1849_s30 = scalar_select %p1397_p10, 1, 0 }
  0x18   : > { %p107_p11 = scmp.eq.s32.totalorder %s106_s29, 0  ;;  %p1401_p12 = scmp.eq.s32.totalorder %s1047_s20, 0 }
  0x19   : > { %p1076_p13 = pneg %p1397_p10  ;;  %s1851_s0 = sld [smem:[#allocation11_spill]] }
  0x1a   : > { %s1850_s4 = scalar_select %p1401_p12, 1, 0 }
  0x1b   : > { %s1411_s8 = scalar_select %p107_p11, %s1276_s14, %s109_s24  }
  0x1c   : > { %p1415_p0 = pnand %p1401_p12, %p1076_p13  ;;  %s1853_s1 = sld [smem:[#allocation12_spill]] }
  0x1e   : > { %p1168_p2 = pneg %p1415_p0 }
  0x1f   : > { %s146_s7 = sshll.u32 %s1851_s0, 4  ;;  %s147_s7 = int_to_ptr.vmem [resolvable:$true] %s146_s7 }
  0x20   : > { %s1166_s21 = scalar_lea.vmem %s147_s7, 32  ;;  %p1174_p6 = scmp.lt.s32.totalorder %s147_s7, %s147_s7 }
  0x21   : > { %p1167_p1 = scmp.ne.s32.totalorder %s147_s7, %s1166_s21  ;;  %p1175_p7 = scmp.lt.s32.totalorder %s1166_s21, %s1166_s21 }
  0x22   : > { %s157_s20 = sshll.u32 %s1853_s1, 4  ;;  %s158_s20 = int_to_ptr.vmem [resolvable:$true] %s157_s20 }
  0x23   : > { %p1169_p4 = pnand %p1168_p2, %p1167_p1  ;;  %p1176_p9 = por %p1175_p7, %p1174_p6 }
  0x25   : > { %p1170_p5 = pneg %p1169_p4 }
  0x27   : > { %p1177_p11 = pnand %p1176_p9, %p1170_p5 }
  0x29   : > { %1180 = shalt.err (!%p1177_p11)
}
  0x2a   : > { %s1298_s24 = smov [#allocation2]   ;;  %s1181_s25 = scalar_lea.vmem %s158_s20, 16 }
  0x2b   : > { %1079 = dma.vmem_to_smem (!%p1415_p0), %s147_s7, 32, %s1298_s24, [#allocation4]  }
  0x2c   : > { %p1182_p13 = scmp.ne.s32.totalorder %s158_s20, %s1181_s25  ;;  %p1189_p12 = scmp.lt.s32.totalorder %s158_s20, %s158_s20 }
  0x2d   : > { %p1190_p10 = scmp.lt.s32.totalorder %s1181_s25, %s1181_s25 }
  0x2e   : > { %p1184_p8 = pnand %p1182_p13, %p1168_p2 }
  0x2f   : > { %p1191_p1 = por %p1190_p10, %p1189_p12 }
  0x30   : > { %p1185_p3 = pneg %p1184_p8 }
  0x32   : > { %p1192_p4 = pnand %p1191_p1, %p1185_p3 }
  0x34   : > { %1195 = shalt.err (!%p1192_p4)
}
  0x35   : > { %s1299_s28 = smov [#allocation5]   ;;  %p1854_p5 = scmp.ne.s32.totalorder %s1849_s30, 0 }
  0x36   : > { %1082 = dma.vmem_to_smem (!%p1415_p0), %s158_s20, 16, %s1299_s28, [#allocation6]  }
  0x37   : > { %182 = sbr.rel (%p1854_p5) target bundleno = 378 (0x17a), region = 32  ;;  %p1855_p6 = scmp.ne.s32.totalorder (!%p1854_p5), %s1850_s4, 0 }
  0x3c   : > { %1255 = dma.done.wait (%p1855_p6), [#allocation4], 32  }
  0x3d   : > { %1257 = vsyncadd (%p1855_p6), [#allocation4], 4294967264 }
  0x3e   : > { %1259 = dma.done.wait (%p1855_p6), [#allocation6], 16  }
  0x3f   : > { %1261 = vsyncadd (%p1855_p6), [#allocation6], 4294967280 }
  0x40   : > { %192 = sfence }
  0x41   : > { %p215_p3 = scmp.lt.s32.totalorder %s1284_s16, 1  ;;  %p217_p8 = scmp.lt.s32.totalorder %s1280_s15, 3  ;;  %vm921_vm0 = vcmask 130048  }
  0x42   : > { %s1441_s29 = smul.u32 49, %s1280_s15  ;;  %s1303_s25 = smov 124  }
  0x43   : > { %s216_s30 = scalar_select %p215_p3, %s1284_s16, 1 }
  0x44   : > { %s218_s5 = scalar_select %p217_p8, %s1280_s15, 3 }
  0x45   : > { %s1065_s6 = smul.u32 12, %s216_s30  ;;  %s248_s7 = sadd.s32 2, %s1441_s29 }
  0x46   : > { %s1064_s4 = smul.u32 3, %s218_s5  ;;  %s249_s9 = sld [smem:[#allocation2 + %s248_s7]] }
  0x47   : > { %s233_s10 = sadd.s32 1, %s1441_s29  ;;  %s263_s24 = sadd.s32 3, %s1441_s29 }
  0x48   : > { %s221_s11 = sadd.s32 %s1065_s6, %s1064_s4  ;;  %s234_s20 = sld [smem:[#allocation2 + %s233_s10]] }
  0x49   : > { %s1057_s21 = sshll.u32 %s221_s11, 3  ;;  %s264_s1 = sld [smem:[#allocation2 + %s263_s24]] }
  0x4a   : > { %s1451_s0 = scalar_lea.vmem %s1839_s2, %s1057_s21  ;;  %s278_s30 = sadd.s32 4, %s1441_s29 }
  0x4b   : > { %v1454_v0 = vld [vmem:[%s1451_s0] sm:$0xff]  ;;  %v1458_v1 = vld [vmem:[%s1451_s0 + $0x8] sm:$0xff]  ;;  %s279_s5 = sld [smem:[#allocation2 + %s278_s30]]  ;;  %s293_s6 = sadd.s32 5, %s1441_s29 }
  0x4c   : > { %v250_v2 = vstv %s249_s9  ;;  %s1300_s7 = smov 126   ;;  %s294_s4 = sld [smem:[#allocation2 + %s293_s6]]  ;;  %v1486_v19 = vld [vmem:[%s1451_s0 + $0x9] sm:$0xff]  ;;  %v1492_v22 = vld [vmem:[%s1451_s0 + $0x1] sm:$0xff] }
  0x4d   : > { %v251_v3 = vmul.f32 %v250_v2, %v1454_v0  ;;  %v252_v5 = vmul.f32 %v250_v2, %v1458_v1  ;;  %s1301_s10 = smov 127   ;;  %s308_s9 = sadd.s32 6, %s1441_s29  ;;  %v1522_v39 = vld [vmem:[%s1451_s0 + $0xa] sm:$0xff]  ;;  %v1528_v42 = vld [vmem:[%s1451_s0 + $0x2] sm:$0xff] }
  0x4e   : > { %v235_v4 = vstv %s234_s20  ;;  %s309_s11 = sld [smem:[#allocation2 + %s308_s9]]  ;;  %s332_s20 = sadd.s32 8, %s1441_s29  ;;  %v1558_v59 = vld [vmem:[%s1451_s0 + $0xb] sm:$0xff]  ;;  %v1564_v62 = vld [vmem:[%s1451_s0 + $0x3] sm:$0xff] }
  0x4f   : > { %255 = vrot.lane.b32.xlu1 %v251_v3, %s1300_s7  ;;  %v236_v6 = vmul.f32 %v235_v4, %v1454_v0  ;;  %v265_v7 = vstv %s264_s1  ;;  %v237_v8 = vmul.f32 %v235_v4, %v1458_v1  ;;  %s1302_s1 = smov 125   ;;  %s333_s21 = sld [smem:[#allocation2 + %s332_s20]] }
  0x50   : > { %v267_v9 = vmul.f32 %v265_v7, %v1458_v1  ;;  %v266_v11 = vmul.f32 %v265_v7, %v1454_v0  ;;  %s347_s24 = sadd.s32 9, %s1441_s29  ;;  %s362_s30 = sadd.s32 10, %s1441_s29 }
  0x51   : > { %240 = vrot.lane.b32.xlu0 %v236_v6, %s1301_s10  ;;  %v280_v10 = vstv %s279_s5  ;;  %s348_s28 = sld [smem:[#allocation2 + %s347_s24]]  ;;  %s1304_s5 = smov 123  }
  0x52   : > { %v282_v12 = vmul.f32 %v280_v10, %v1458_v1  ;;  %v295_v13 = vstv %s294_s4  ;;  %v281_v14 = vmul.f32 %v280_v10, %v1454_v0  ;;  %s363_s6 = sld [smem:[#allocation2 + %s362_s30]]  ;;  %s377_s4 = sadd.s32 11, %s1441_s29 }
  0x53   : > { %257 = vrot.lane.b32.xlu1 %v252_v5, %s1300_s7  ;;  %v297_v15 = vmul.f32 %v295_v13, %v1458_v1  ;;  %v296_v17 = vmul.f32 %v295_v13, %v1454_v0  ;;  %s1305_s9 = smov 122   ;;  %s392_s20 = sadd.s32 12, %s1441_s29 }
  0x54   : > { %v310_v16 = vstv %s309_s11  ;;  %s378_s11 = sld [smem:[#allocation2 + %s377_s4]]  ;;  %s407_s24 = sadd.s32 13, %s1441_s29 }
  0x55   : > { %242 = vrot.lane.b32.xlu0 %v237_v8, %s1301_s10  ;;  %v312_v18 = vmul.f32 %v310_v16, %v1458_v1  ;;  %v334_v20 = vstv %s333_s21  ;;  %v311_v21 = vmul.f32 %v310_v16, %v1454_v0  ;;  %s393_s21 = sld [smem:[#allocation2 + %s392_s20]]  ;;  %s431_s30 = sadd.s32 15, %s1441_s29 }
  0x56   : > { %v336_v23 = vmul.f32 %v334_v20, %v1486_v19  ;;  %v335_v25 = vmul.f32 %v334_v20, %v1492_v22  ;;  %s446_s4 = sadd.s32 16, %s1441_s29  ;;  %s461_s20 = sadd.s32 17, %s1441_s29 }
  0x57   : > { %272 = vrot.lane.b32.xlu1 %v267_v9, %s1302_s1  ;;  %v349_v24 = vstv %s348_s28  ;;  %s408_s28 = sld [smem:[#allocation2 + %s407_s24]]  ;;  %s476_s24 = sadd.s32 18, %s1441_s29 }
  0x58   : > { %v351_v26 = vmul.f32 %v349_v24, %v1486_v19  ;;  %v364_v27 = vstv %s363_s6  ;;  %v350_v28 = vmul.f32 %v349_v24, %v1492_v22  ;;  %s432_s6 = sld [smem:[#allocation2 + %s431_s30]]  ;;  %s491_s30 = sadd.s32 19, %s1441_s29 }
  0x59   : > { %270 = vrot.lane.b32.xlu0 %v266_v11, %s1302_s1  ;;  %v366_v29 = vmul.f32 %v364_v27, %v1486_v19  ;;  %v365_v31 = vmul.f32 %v364_v27, %v1492_v22  ;;  %p1856_p12 = scmp.ne.s32.totalorder %s1847_s26, 0 }
  0x5a   : > { %v379_v30 = vstv %s378_s11  ;;  %s447_s11 = sld [smem:[#allocation2 + %s446_s4]]  ;;  %s506_s4 = sadd.s32 20, %s1441_s29 }
  0x5b   : > { %287 = vrot.lane.b32.xlu1 %v282_v12, %s1303_s25  ;;  %v381_v32 = vmul.f32 %v379_v30, %v1486_v19  ;;  %v394_v33 = vstv %s393_s21  ;;  %v380_v34 = vmul.f32 %v379_v30, %v1492_v22  ;;  %s462_s21 = sld [smem:[#allocation2 + %s461_s20]]  ;;  %s530_s20 = sadd.s32 22, %s1441_s29 }
  0x5c   : > { %v396_v35 = vmul.f32 %v394_v33, %v1486_v19  ;;  %v395_v37 = vmul.f32 %v394_v33, %v1492_v22 }
  0x5d   : > { %285 = vrot.lane.b32.xlu0 %v281_v14, %s1303_s25  ;;  %v409_v36 = vstv %s408_s28  ;;  %s477_s28 = sld [smem:[#allocation2 + %s476_s24]]  ;;  %s545_s24 = sadd.s32 23, %s1441_s29 }
  0x5e   : > { %v411_v38 = vmul.f32 %v409_v36, %v1486_v19  ;;  %v433_v40 = vstv %s432_s6  ;;  %v410_v41 = vmul.f32 %v409_v36, %v1492_v22  ;;  %s492_s6 = sld [smem:[#allocation2 + %s491_s30]]  ;;  %s560_s30 = sadd.s32 24, %s1441_s29 }
  0x5f   : > { %302 = vrot.lane.b32.xlu1 %v297_v15, %s1304_s5  ;;  %v435_v43 = vmul.f32 %v433_v40, %v1522_v39  ;;  %v434_v45 = vmul.f32 %v433_v40, %v1528_v42 }
  0x60   : > { %v448_v44 = vstv %s447_s11  ;;  %s507_s11 = sld [smem:[#allocation2 + %s506_s4]]  ;;  %s575_s4 = sadd.s32 25, %s1441_s29 }
  0x61   : > { %300 = vrot.lane.b32.xlu0 %v296_v17, %s1304_s5  ;;  %v450_v46 = vmul.f32 %v448_v44, %v1522_v39  ;;  %v463_v47 = vstv %s462_s21  ;;  %v449_v48 = vmul.f32 %v448_v44, %v1528_v42  ;;  %s531_s21 = sld [smem:[#allocation2 + %s530_s20]]  ;;  %s590_s20 = sadd.s32 26, %s1441_s29  ;;  %v1594_v17 = vld [vmem:[%s1451_s0 + $0xc] sm:$0xff] }
  0x62   : > { %v465_v49 = vmul.f32 %v463_v47, %v1522_v39  ;;  %v464_v51 = vmul.f32 %v463_v47, %v1528_v42  ;;  %v1648_v47 = vld [vmem:[%s1451_s0 + $0x5] sm:$0xff] }
  0x63   : > { %317 = vrot.lane.b32.xlu1 %v312_v18, %s1305_s9  ;;  %v478_v50 = vstv %s477_s28  ;;  %s546_s28 = sld [smem:[#allocation2 + %s545_s24]]  ;;  %s605_s24 = sadd.s32 27, %s1441_s29 }
  0x64   : > { %v480_v52 = vmul.f32 %v478_v50, %v1522_v39  ;;  %v493_v53 = vstv %s492_s6  ;;  %v479_v54 = vmul.f32 %v478_v50, %v1528_v42  ;;  %s561_s6 = sld [smem:[#allocation2 + %s560_s30]]  ;;  %s629_s30 = sadd.s32 29, %s1441_s29 }
  0x65   : > { %315 = vrot.lane.b32.xlu0 %v311_v21, %s1305_s9  ;;  %v495_v55 = vmul.f32 %v493_v53, %v1522_v39  ;;  %v494_v57 = vmul.f32 %v493_v53, %v1528_v42  ;;  %v1600_v21 = vld [vmem:[%s1451_s0 + $0x4] sm:$0xff] }
  0x66   : > { %v508_v56 = vstv %s507_s11  ;;  %s576_s11 = sld [smem:[#allocation2 + %s575_s4]]  ;;  %s644_s4 = sadd.s32 30, %s1441_s29 }
  0x67   : > { %341 = vrot.lane.b32.xlu1 %v336_v23, %s1301_s10  ;;  %v510_v58 = vmul.f32 %v508_v56, %v1522_v39  ;;  %v532_v60 = vstv %s531_s21  ;;  %v509_v61 = vmul.f32 %v508_v56, %v1528_v42  ;;  %s591_s21 = sld [smem:[#allocation2 + %s590_s20]]  ;;  %s659_s20 = sadd.s32 31, %s1441_s29 }
  0x68   : > { %v534_v63 = vmul.f32 %v532_v60, %v1558_v59  ;;  %v533_v3 = vmul.f32 %v532_v60, %v1564_v62 }
  0x69   : > { %339 = vrot.lane.b32.xlu0 %v335_v25, %s1301_s10  ;;  %v547_v2 = vstv %s546_s28  ;;  %s606_s28 = sld [smem:[#allocation2 + %s605_s24]]  ;;  %s674_s24 = sadd.s32 32, %s1441_s29 }
  0x6a   : > { %v549_v4 = vmul.f32 %v547_v2, %v1558_v59  ;;  %v562_v5 = vstv %s561_s6  ;;  %v548_v6 = vmul.f32 %v547_v2, %v1564_v62  ;;  %s630_s6 = sld [smem:[#allocation2 + %s629_s30]]  ;;  %s689_s30 = sadd.s32 33, %s1441_s29 }
  0x6b   : > { %356 = vrot.lane.b32.xlu1 %v351_v26, %s1300_s7  ;;  %v564_v7 = vmul.f32 %v562_v5, %v1558_v59  ;;  %v563_v9 = vmul.f32 %v562_v5, %v1564_v62 }
  0x6c   : > { %v577_v8 = vstv %s576_s11  ;;  %s645_s11 = sld [smem:[#allocation2 + %s644_s4]]  ;;  %s704_s4 = sadd.s32 34, %s1441_s29 }
  0x6d   : > { %354 = vrot.lane.b32.xlu0 %v350_v28, %s1300_s7  ;;  %v579_v10 = vmul.f32 %v577_v8, %v1558_v59  ;;  %v592_v11 = vstv %s591_s21  ;;  %v578_v12 = vmul.f32 %v577_v8, %v1564_v62  ;;  %s660_s21 = sld [smem:[#allocation2 + %s659_s20]] }
  0x6e   : > { %v594_v13 = vmul.f32 %v592_v11, %v1558_v59  ;;  %v593_v15 = vmul.f32 %v592_v11, %v1564_v62  ;;  %s1617_s20 = sld [smem:[#allocation2 + %s1441_s29]] }
  0x6f   : > { %371 = vrot.lane.b32.xlu1 %v366_v29, %s1302_s1  ;;  %v607_v14 = vstv %s606_s28  ;;  %s675_s28 = sld [smem:[#allocation2 + %s674_s24]] }
  0x70   : > { %v609_v16 = vmul.f32 %v607_v14, %v1558_v59  ;;  %v631_v18 = vstv %s630_s6  ;;  %v608_v20 = vmul.f32 %v607_v14, %v1564_v62  ;;  %s690_s6 = sld [smem:[#allocation2 + %s689_s30]] }
  0x71   : > { %369 = vrot.lane.b32.xlu0 %v365_v31, %s1302_s1  ;;  %v633_v23 = vmul.f32 %v631_v18, %v1594_v17  ;;  %v632_v25 = vmul.f32 %v631_v18, %v1600_v21 }
  0x72   : > { %v646_v24 = vstv %s645_s11  ;;  %s705_s11 = sld [smem:[#allocation2 + %s704_s4]] }
  0x73   : > { %386 = vrot.lane.b32.xlu1 %v381_v32, %s1303_s25  ;;  %v648_v26 = vmul.f32 %v646_v24, %v1594_v17  ;;  %v661_v27 = vstv %s660_s21  ;;  %v647_v28 = vmul.f32 %v646_v24, %v1600_v21  ;;  %s728_s21 = sadd.s32 36, %s1441_s29 }
  0x74   : > { %v663_v29 = vmul.f32 %v661_v27, %v1594_v17  ;;  %v662_v31 = vmul.f32 %v661_v27, %v1600_v21  ;;  %s1622_s24 = sld [smem:[#allocation2 + %s728_s21]]  ;;  %s788_s21 = sadd.s32 40, %s1441_s29 }
  0x75   : > { %384 = vrot.lane.b32.xlu0 %v380_v34, %s1303_s25  ;;  %v676_v30 = vstv %s675_s28  ;;  %s743_s28 = sadd.s32 37, %s1441_s29 }
  0x76   : > { %v678_v32 = vmul.f32 %v676_v30, %v1594_v17  ;;  %v691_v33 = vstv %s690_s6  ;;  %v677_v34 = vmul.f32 %v676_v30, %v1600_v21  ;;  %s1629_s30 = sld [smem:[#allocation2 + %s743_s28]]  ;;  %s758_s6 = sadd.s32 38, %s1441_s29 }
  0x77   : > { %401 = vrot.lane.b32.xlu1 %v396_v35, %s1304_s5  ;;  %v693_v35 = vmul.f32 %v691_v33, %v1594_v17  ;;  %s1642_s4 = sld [smem:[#allocation2 + %s758_s6]]  ;;  %s803_s6 = sadd.s32 41, %s1441_s29 }
  0x78   : > { %v706_v36 = vstv %s705_s11  ;;  %s773_s11 = sadd.s32 39, %s1441_s29  ;;  %s1663_s28 = sld [smem:[#allocation2 + %s788_s21]] }
  0x79   : > { %399 = vrot.lane.b32.xlu0 %v395_v37, %s1304_s5  ;;  %v692_v37 = vmul.f32 %v691_v33, %v1600_v21  ;;  %v708_v40 = vmul.f32 %v706_v36, %v1594_v17  ;;  %s842_s21 = sadd.s32 44, %s1441_s29  ;;  %v1700_v33 = vld [vmem:[%s1451_s0 + $0xe] sm:$0xff] }
  0x7a   : > { %v730_v44 = vstv %s1622_s24  ;;  %s323_s24 = sadd.s32 7, %s1441_s29 }
  0x7b   : > { %416 = vrot.lane.b32.xlu1 %v411_v38, %s1305_s9  ;;  %v228_v38 = vstv %s1617_s20  ;;  %s1654_s20 = sld [smem:[#allocation2 + %s773_s11]]  ;;  %v731_v53 = vmul.f32 %v730_v44, %v1648_v47  ;;  %s827_s11 = sadd.s32 43, %s1441_s29 }
  0x7c   : > { %v230_v50 = vmul.f32 %v228_v38, %v1458_v1 }
  0x7d   : > { %414 = vrot.lane.b32.xlu0 %v410_v41, %s1305_s9  ;;  %v229_v41 = vmul.f32 %v228_v38, %v1454_v0  ;;  %v760_v1 = vstv %s1642_s4  ;;  %s1673_s4 = sld [smem:[#allocation2 + %s803_s6]]  ;;  %s872_s6 = sadd.s32 46, %s1441_s29 }
  0x7f   : > { %440 = vrot.lane.b32.xlu1 %v435_v43, %s1301_s10  ;;  %v1639_v43 = vld [vmem:[%s1451_s0 + $0xd] sm:$0xff] }
  0x80   : > { %v732_v0 = vmul.f32 %v730_v44, %v1639_v43  ;;  %v762_v2 = vmul.f32 %v760_v1, %v1639_v43 }
  0x81   : > { %438 = vrot.lane.b32.xlu0 %v434_v45, %s1301_s10  ;;  %v775_v5 = vstv %s1654_s20  ;;  %s1681_s20 = sld [smem:[#allocation2 + %s827_s11]]  ;;  %s887_s11 = sadd.s32 47, %s1441_s29 }
  0x82   : > { %v776_v14 = vmul.f32 %v775_v5, %v1648_v47 }
  0x83   : > { %455 = vrot.lane.b32.xlu1 %v450_v46, %s1300_s7  ;;  %v707_v46 = vmul.f32 %v706_v36, %v1600_v21  ;;  %v805_v24 = vstv %s1673_s4  ;;  %s1714_s4 = sld [smem:[#allocation2 + %s872_s6]] }
  0x85   : > { %453 = vrot.lane.b32.xlu0 %v449_v48, %s1300_s7 }
  0x87   : > { %470 = vrot.lane.b32.xlu1 %v465_v49, %s1302_s1 }
  0x89   : > { %468 = vrot.lane.b32.xlu0 %v464_v51, %s1302_s1  ;;  %v745_v51 = vstv %s1629_s30  ;;  %s1667_s30 = sld [smem:[#allocation2 + %s323_s24]] }
  0x8a   : > { %v747_v56 = vmul.f32 %v745_v51, %v1639_v43  ;;  %v746_v60 = vmul.f32 %v745_v51, %v1648_v47  ;;  %s1691_s24 = sld [smem:[#allocation2 + %s842_s21]] }
  0x8b   : > { %485 = vrot.lane.b32.xlu1 %v480_v52, %s1303_s25 }
  0x8d   : > { %483 = vrot.lane.b32.xlu0 %v479_v54, %s1303_s25 }
  0x8f   : > { %500 = vrot.lane.b32.xlu1 %v495_v55, %s1304_s5 }
  0x91   : > { %498 = vrot.lane.b32.xlu0 %v494_v57, %s1304_s5 }
  0x93   : > { %515 = vrot.lane.b32.xlu1 %v510_v58, %s1305_s9 }
  0x95   : > { %513 = vrot.lane.b32.xlu0 %v509_v61, %s1305_s9 }
  0x97   : > { %539 = vrot.lane.b32.xlu1 %v534_v63, %s1301_s10 }
  0x99   : > { %537 = vrot.lane.b32.xlu0 %v533_v3, %s1301_s10 }
  0x9b   : > { %554 = vrot.lane.b32.xlu1 %v549_v4, %s1300_s7 }
  0x9d   : > { %552 = vrot.lane.b32.xlu0 %v548_v6, %s1300_s7 }
  0x9f   : > { %569 = vrot.lane.b32.xlu1 %v564_v7, %s1302_s1  ;;  %v761_v7 = vmul.f32 %v760_v1, %v1648_v47 }
  0xa1   : > { %567 = vrot.lane.b32.xlu0 %v563_v9, %s1302_s1 }
  0xa3   : > { %584 = vrot.lane.b32.xlu1 %v579_v10, %s1303_s25  ;;  %v777_v10 = vmul.f32 %v775_v5, %v1639_v43 }
  0xa5   : > { %582 = vrot.lane.b32.xlu0 %v578_v12, %s1303_s25  ;;  %v790_v12 = vstv %s1663_s28  ;;  %s857_s28 = sadd.s32 45, %s1441_s29 }
  0xa6   : > { %v792_v18 = vmul.f32 %v790_v12, %v1639_v43 }
  0xa7   : > { %599 = vrot.lane.b32.xlu1 %v594_v13, %s1304_s5 }
  0xa9   : > { %597 = vrot.lane.b32.xlu0 %v593_v15, %s1304_s5  ;;  %v327_v15 = vstv %s1667_s30  ;;  %s1703_s30 = sld [smem:[#allocation2 + %s857_s28]] }
  0xab   : > { %614 = vrot.lane.b32.xlu1 %v609_v16, %s1305_s9 }
  0xad   : > { %612 = vrot.lane.b32.xlu0 %v608_v20, %s1305_s9 }
  0xaf   : > { %638 = vrot.lane.b32.xlu1 %v633_v23, %s1301_s10  ;;  %v329_v23 = vmul.f32 %v327_v15, %v1486_v19  ;;  %v807_v19 = vmul.f32 %v805_v24, %v1639_v43 }
  0xb1   : > { %636 = vrot.lane.b32.xlu0 %v632_v25, %s1301_s10 }
  0xb3   : > { %653 = vrot.lane.b32.xlu1 %v648_v26, %s1300_s7  ;;  %v791_v26 = vmul.f32 %v790_v12, %v1648_v47 }
  0xb5   : > { %651 = vrot.lane.b32.xlu0 %v647_v28, %s1300_s7 }
  0xb7   : > { %668 = vrot.lane.b32.xlu1 %v663_v29, %s1302_s1  ;;  %v328_v29 = vmul.f32 %v327_v15, %v1492_v22  ;;  %v806_v22 = vmul.f32 %v805_v24, %v1648_v47 }
  0xb9   : > { %666 = vrot.lane.b32.xlu0 %v662_v31, %s1302_s1 }
  0xbb   : > { %683 = vrot.lane.b32.xlu1 %v678_v32, %s1303_s25 }
  0xbd   : > { %681 = vrot.lane.b32.xlu0 %v677_v34, %s1303_s25  ;;  %v829_v34 = vstv %s1681_s20  ;;  %s422_s20 = sadd.s32 14, %s1441_s29 }
  0xbe   : > { %s1727_s21 = sld [smem:[#allocation2 + %s422_s20]]  ;;  %s1059_s20 = sshll.u32 %s1280_s15, 1 }
  0xbf   : > { %698 = vrot.lane.b32.xlu1 %v693_v35, %s1304_s5 }
  0xc1   : > { %696 = vrot.lane.b32.xlu0 %v692_v37, %s1304_s5  ;;  %v256_v45 = vpop.permute.xlu1 %255  ;;  %v1709_v37 = vld [vmem:[%s1451_s0 + $0x6] sm:$0xff]  ;;  %s1723_s0 = sld [smem:[#allocation2 + %s887_s11]] }
  0xc3   : > { %v241_v48 = vpop.permute.xlu0 %240  ;;  %713 = vrot.lane.b32.xlu1 %v708_v40, %s1305_s9  ;;  %v831_v40 = vmul.f32 %v829_v34, %v1700_v33 }
  0xc4   : > { %v246_v49 = vadd.f32 %v241_v48, %v229_v41  ;;  %v844_v41 = vstv %s1691_s24  ;;  %s902_s24 = sadd.s32 48, %s1441_s29  ;;  %v426_v5 = vstv %s1727_s21 }
  0xc5   : > { %711 = vrot.lane.b32.xlu0 %v707_v46, %s1305_s9  ;;  %v258_v52 = vpop.permute.xlu1 %257  ;;  %v846_v48 = vmul.f32 %v844_v41, %v1700_v33  ;;  %s1733_s28 = sld [smem:[#allocation2 + %s902_s24]]  ;;  %v428_v12 = vmul.f32 %v426_v5, %v1522_v39 }
  0xc6   : > { %v261_v54 = vadd.f32 %v256_v45, %v246_v49  ;;  %v830_v45 = vmul.f32 %v829_v34, %v1709_v37 }
  0xc7   : > { %v243_v55 = vpop.permute.xlu0 %242  ;;  %737 = vrot.lane.b32.xlu1 %v732_v0, %s1301_s10  ;;  %v859_v0 = vstv %s1703_s30  ;;  %s818_s30 = sadd.s32 42, %s1441_s29 }
  0xc8   : > { %v247_v57 = vadd.f32 %v243_v55, %v230_v50  ;;  %v845_v50 = vmul.f32 %v844_v41, %v1709_v37  ;;  %s819_s6 = sld [smem:[#allocation2 + %s818_s30]] }
  0xc9   : > { %735 = vrot.lane.b32.xlu0 %v731_v53, %s1301_s10  ;;  %v273_v58 = vpop.permute.xlu1 %272 }
  0xca   : > { %v262_v61 = vadd.f32 %v258_v52, %v247_v57  ;;  %v861_v52 = vmul.f32 %v859_v0, %v1700_v33 }
  0xcb   : > { %v271_v63 = vpop.permute.xlu0 %270  ;;  %752 = vrot.lane.b32.xlu1 %v747_v56, %s1300_s7  ;;  %v860_v56 = vmul.f32 %v859_v0, %v1709_v37 }
  0xcc   : > { %v277_v3 = vadd.f32 %v273_v58, %v262_v61  ;;  %v276_v4 = vadd.f32 %v271_v63, %v261_v54  ;;  %v874_v54 = vstv %s1714_s4  ;;  %s1770_s4 = sld [smem:[#allocation5 + %s1280_s15]] }
  0xcd   : > { %750 = vrot.lane.b32.xlu0 %v746_v60, %s1300_s7  ;;  %v288_v6 = vpop.permute.xlu1 %287  ;;  %v876_v60 = vmul.f32 %v874_v54, %v1700_v33 }
  0xce   : > { %v292_v8 = vadd.f32 %v288_v6, %v277_v3 }
  0xcf   : > { %v286_v9 = vpop.permute.xlu0 %285  ;;  %767 = vrot.lane.b32.xlu1 %v762_v2, %s1302_s1  ;;  %v889_v2 = vstv %s1723_s0  ;;  %s1060_s0 = sshll.u32 %s1284_s16, 3 }
  0xd0   : > { %v291_v11 = vadd.f32 %v286_v9, %v276_v4  ;;  %v875_v4 = vmul.f32 %v874_v54, %v1709_v37  ;;  %v891_v9 = vmul.f32 %v889_v2, %v1700_v33  ;;  %v890_v15 = vmul.f32 %v889_v2, %v1709_v37  ;;  %s937_s21 = sadd.s32 %s1060_s0, %s1059_s20 }
  0xd1   : > { %765 = vrot.lane.b32.xlu0 %v761_v7, %s1302_s1  ;;  %v303_v13 = vpop.permute.xlu1 %302 }
  0xd2   : > { %v307_v20 = vadd.f32 %v303_v13, %v292_v8  ;;  %v904_v13 = vstv %s1733_s28 }
  0xd3   : > { %v301_v16 = vpop.permute.xlu0 %300  ;;  %782 = vrot.lane.b32.xlu1 %v777_v10, %s1303_s25  ;;  %v906_v24 = vmul.f32 %v904_v13, %v1700_v33 }
  0xd4   : > { %v306_v27 = vadd.f32 %v301_v16, %v291_v11 }
  0xd5   : > { %780 = vrot.lane.b32.xlu0 %v776_v14, %s1303_s25  ;;  %v318_v25 = vpop.permute.xlu1 %317 }
  0xd6   : > { %v322_v28 = vadd.f32 %v318_v25, %v307_v20  ;;  %v427_v20 = vmul.f32 %v426_v5, %v1528_v42 }
  0xd7   : > { %v316_v30 = vpop.permute.xlu0 %315  ;;  %797 = vrot.lane.b32.xlu1 %v792_v18, %s1304_s5 }
  0xd8   : > { %v331_v31 = vadd.f32 %v329_v23, %v322_v28  ;;  %v321_v32 = vadd.f32 %v316_v30, %v306_v27  ;;  %v905_v27 = vmul.f32 %v904_v13, %v1709_v37 }
  0xd9   : > { %795 = vrot.lane.b32.xlu0 %v791_v26, %s1304_s5  ;;  %v342_v35 = vpop.permute.xlu1 %341 }
  0xda   : > { %v330_v36 = vadd.f32 %v328_v29, %v321_v32  ;;  %v346_v53 = vadd.f32 %v342_v35, %v331_v31 }
  0xdb   : > { %v340_v38 = vpop.permute.xlu0 %339  ;;  %812 = vrot.lane.b32.xlu1 %v807_v19, %s1305_s9 }
  0xdc   : > { %v345_v57 = vadd.f32 %v340_v38, %v330_v36 }
  0xdd   : > { %810 = vrot.lane.b32.xlu0 %v806_v22, %s1305_s9  ;;  %v357_v44 = vpop.permute.xlu1 %356 }
  0xde   : > { %v361_v1 = vadd.f32 %v357_v44, %v346_v53 }
  0xdf   : > { %v355_v46 = vpop.permute.xlu0 %354  ;;  %836 = vrot.lane.b32.xlu1 %v831_v40, %s1301_s10 }
  0xe0   : > { %v360_v61 = vadd.f32 %v355_v46, %v345_v57 }
  0xe1   : > { %834 = vrot.lane.b32.xlu0 %v830_v45, %s1301_s10  ;;  %v372_v49 = vpop.permute.xlu1 %371 }
  0xe2   : > { %v376_v63 = vadd.f32 %v372_v49, %v361_v1 }
  0xe3   : > { %v370_v51 = vpop.permute.xlu0 %369  ;;  %851 = vrot.lane.b32.xlu1 %v846_v48, %s1300_s7 }
  0xe4   : > { %v375_v6 = vadd.f32 %v370_v51, %v360_v61 }
  0xe5   : > { %849 = vrot.lane.b32.xlu0 %v845_v50, %s1300_s7  ;;  %v387_v55 = vpop.permute.xlu1 %386  ;;  %s521_s7 = sadd.s32 21, %s1441_s29 }
  0xe6   : > { %v391_v7 = vadd.f32 %v387_v55, %v376_v63  ;;  %s522_s10 = sld [smem:[#allocation2 + %s521_s7]]  ;;  %s1061_s7 = sshll.u32 %s937_s21, 7 }
  0xe7   : > { %v385_v58 = vpop.permute.xlu0 %384  ;;  %866 = vrot.lane.b32.xlu1 %v861_v52, %s1302_s1 }
  0xe8   : > { %v390_v10 = vadd.f32 %v385_v58, %v375_v6 }
  0xe9   : > { %864 = vrot.lane.b32.xlu0 %v860_v56, %s1302_s1  ;;  %v402_v3 = vpop.permute.xlu1 %401  ;;  %s620_s1 = sadd.s32 28, %s1441_s29 }
  0xea   : > { %v406_v11 = vadd.f32 %v402_v3, %v391_v7 }
  0xeb   : > { %v400_v8 = vpop.permute.xlu0 %399  ;;  %881 = vrot.lane.b32.xlu1 %v876_v60, %s1303_s25 }
  0xec   : > { %v405_v16 = vadd.f32 %v400_v8, %v390_v10  ;;  %v525_v44 = vstv %s522_s10  ;;  %s1780_s10 = scalar_lea.hbm %s1840_s3, %s1061_s7 }
  0xed   : > { %879 = vrot.lane.b32.xlu0 %v875_v4, %s1303_s25  ;;  %v417_v14 = vpop.permute.xlu1 %416  ;;  %v527_v50 = vmul.f32 %v525_v44, %v1558_v59  ;;  %v526_v54 = vmul.f32 %v525_v44, %v1564_v62  ;;  %s621_s25 = sld [smem:[#allocation2 + %s620_s1]] }
  0xee   : > { %v421_v18 = vadd.f32 %v417_v14, %v406_v11 }
  0xef   : > { %v415_v23 = vpop.permute.xlu0 %414  ;;  %896 = vrot.lane.b32.xlu1 %v891_v9, %s1304_s5 }
  0xf0   : > { %v430_v25 = vadd.f32 %v428_v12, %v421_v18  ;;  %v420_v26 = vadd.f32 %v415_v23, %v405_v16 }
  0xf1   : > { %894 = vrot.lane.b32.xlu0 %v890_v15, %s1304_s5  ;;  %v441_v39 = vpop.permute.xlu1 %440  ;;  %s719_s5 = sadd.s32 35, %s1441_s29  ;;  %s212_s29 = sand.u32 1, %s1272_s13  }
  0xf2   : > { %v429_v28 = vadd.f32 %v427_v20, %v420_v26  ;;  %v445_v32 = vadd.f32 %v441_v39, %v430_v25  ;;  %s1056_s11 = sshll.u32 %s212_s29, 4  ;;  %s1786_s1 = scalar_lea.sflag [#allocation3], %s212_s29 }
  0xf3   : > { %v439_v29 = vpop.permute.xlu0 %438  ;;  %911 = vrot.lane.b32.xlu1 %v906_v24, %s1305_s9  ;;  %v624_v10 = vstv %s621_s25  ;;  %s214_s24 = scalar_lea.vmem [#allocation7], %s1056_s11 }
  0xf4   : > { %v444_v35 = vadd.f32 %v439_v29, %v429_v28  ;;  %v626_v16 = vmul.f32 %v624_v10, %v1594_v17  ;;  %v625_v24 = vmul.f32 %v624_v10, %v1600_v21  ;;  %s940_s28 = sshll.u32 %s214_s24, 4  ;;  %s1782_s28 = int_to_ptr.vmem [resolvable:$true] %s940_s28 }
  0xf5   : > { %909 = vrot.lane.b32.xlu0 %v905_v27, %s1305_s9  ;;  %v456_v30 = vpop.permute.xlu1 %455  ;;  %s720_s9 = sld [smem:[#allocation2 + %s719_s5]]  ;;  %s1196_s25 = scalar_lea.vmem %s1782_s28, 256 }
  0xf6   : > { %v460_v22 = vadd.f32 %v456_v30, %v445_v32  ;;  %p1197_p10 = scmp.ne.s32.totalorder %s1782_s28, %s1196_s25  ;;  %s1306_s5 = smov [#allocation7]  }
  0xf7   : > { %v454_v42 = vpop.permute.xlu0 %453 }
  0xf8   : > { %v459_v38 = vadd.f32 %v454_v42, %v444_v35  ;;  %p1198_p0 = pnand %p1197_p10, %p1856_p12 }
  0xf9   : > { %v471_v19 = vpop.permute.xlu1 %470 }
  0xfa   : > { %v475_v40 = vadd.f32 %v471_v19, %v460_v22  ;;  %p1199_p2 = pneg %p1198_p0 }
  0xfb   : > { %v469_v31 = vpop.permute.xlu0 %468 }
  0xfc   : > { %v474_v45 = vadd.f32 %v469_v31, %v459_v38 }
  0xfd   : > { %v486_v34 = vpop.permute.xlu1 %485 }
  0xfe   : > { %v490_v46 = vadd.f32 %v486_v34, %v475_v40 }
  0xff   : > { %v484_v36 = vpop.permute.xlu0 %483 }
 0x100   : > { %v489_v0 = vadd.f32 %v484_v36, %v474_v45 }
 0x101   : > { %v501_v41 = vpop.permute.xlu1 %500 }
 0x102   : > { %v505_v49 = vadd.f32 %v501_v41, %v490_v46 }
 0x103   : > { %v499_v48 = vpop.permute.xlu0 %498 }
 0x104   : > { %v504_v52 = vadd.f32 %v499_v48, %v489_v0 }
 0x105   : > { %v516_v51 = vpop.permute.xlu1 %515 }
 0x106   : > { %v520_v53 = vadd.f32 %v516_v51, %v505_v49 }
 0x107   : > { %v514_v55 = vpop.permute.xlu0 %513 }
 0x108   : > { %v519_v56 = vadd.f32 %v514_v55, %v504_v52  ;;  %v529_v57 = vadd.f32 %v527_v50, %v520_v53  ;;  %v723_v50 = vstv %s720_s9  ;;  %s1200_s9 = sshll.u32 %s1306_s5, 4  ;;  %s1201_s9 = int_to_ptr.vmem [resolvable:$false] %s1200_s9 }
 0x109   : > { %v540_v1 = vpop.permute.xlu1 %539  ;;  %s1202_s30 = scalar_lea.vmem %s1201_s9, 512  ;;  %p1203_p7 = scmp.lt.s32.totalorder %s1782_s28, %s1201_s9 }
 0x10a   : > { %v528_v58 = vadd.f32 %v526_v54, %v519_v56  ;;  %v544_v4 = vadd.f32 %v540_v1, %v529_v57  ;;  %v725_v57 = vmul.f32 %v723_v50, %v1639_v43  ;;  %p1204_p9 = scmp.lt.s32.totalorder %s1202_s30, %s1196_s25 }
 0x10b   : > { %v538_v60 = vpop.permute.xlu0 %537 }
 0x10c   : > { %v543_v59 = vadd.f32 %v538_v60, %v528_v58  ;;  %v724_v60 = vmul.f32 %v723_v50, %v1648_v47  ;;  %p1205_p11 = por %p1204_p9, %p1203_p7 }
 0x10d   : > { %v555_v61 = vpop.permute.xlu1 %554 }
 0x10e   : > { %v559_v6 = vadd.f32 %v555_v61, %v544_v4  ;;  %p1206_p13 = pnand %p1205_p11, %p1199_p2 }
 0x10f   : > { %v553_v63 = vpop.permute.xlu0 %552 }
 0x110   : > { %v558_v8 = vadd.f32 %v553_v63, %v543_v59 }
 0x111   : > { %v570_v2 = vpop.permute.xlu1 %569 }
 0x112   : > { %v574_v9 = vadd.f32 %v570_v2, %v559_v6 }
 0x113   : > { %v568_v3 = vpop.permute.xlu0 %567 }
 0x114   : > { %v573_v11 = vadd.f32 %v568_v3, %v558_v8 }
 0x115   : > { %v585_v5 = vpop.permute.xlu1 %584 }
 0x116   : > { %v589_v12 = vadd.f32 %v585_v5, %v574_v9 }
 0x117   : > { %v583_v7 = vpop.permute.xlu0 %582 }
 0x118   : > { %v588_v14 = vadd.f32 %v583_v7, %v573_v11 }
 0x119   : > { %v600_v62 = vpop.permute.xlu1 %599 }
 0x11a   : > { %v604_v15 = vadd.f32 %v600_v62, %v589_v12  ;;  %v822_v12 = vstv %s819_s6 }
 0x11b   : > { %v598_v13 = vpop.permute.xlu0 %597 }
 0x11c   : > { %v603_v20 = vadd.f32 %v598_v13, %v588_v14 }
 0x11d   : > { %v615_v18 = vpop.permute.xlu1 %614 }
 0x11e   : > { %v619_v23 = vadd.f32 %v615_v18, %v604_v15 }
 0x11f   : > { %v613_v25 = vpop.permute.xlu0 %612 }
 0x120   : > { %v618_v26 = vadd.f32 %v613_v25, %v603_v20  ;;  %v628_v39 = vadd.f32 %v626_v16, %v619_v23  ;;  %v824_v20 = vmul.f32 %v822_v12, %v1700_v33  ;;  %v823_v25 = vmul.f32 %v822_v12, %v1709_v37 }
 0x121   : > { %v639_v27 = vpop.permute.xlu1 %638 }
 0x122   : > { %v627_v28 = vadd.f32 %v625_v24, %v618_v26  ;;  %v643_v38 = vadd.f32 %v639_v27, %v628_v39 }
 0x123   : > { %v637_v29 = vpop.permute.xlu0 %636 }
 0x124   : > { %v642_v40 = vadd.f32 %v637_v29, %v627_v28 }
 0x125   : > { %v654_v30 = vpop.permute.xlu1 %653 }
 0x126   : > { %v658_v41 = vadd.f32 %v654_v30, %v643_v38 }
 0x127   : > { %v652_v42 = vpop.permute.xlu0 %651 }
 0x128   : > { %v657_v45 = vadd.f32 %v652_v42, %v642_v40 }
 0x129   : > { %v669_v19 = vpop.permute.xlu1 %668 }
 0x12a   : > { %v673_v46 = vadd.f32 %v669_v19, %v658_v41 }
 0x12b   : > { %v667_v31 = vpop.permute.xlu0 %666 }
 0x12c   : > { %v672_v0 = vadd.f32 %v667_v31, %v657_v45 }
 0x12d   : > { %v684_v32 = vpop.permute.xlu1 %683 }
 0x12e   : > { %v688_v49 = vadd.f32 %v684_v32, %v673_v46 }
 0x12f   : > { %v682_v34 = vpop.permute.xlu0 %681 }
 0x130   : > { %v687_v52 = vadd.f32 %v682_v34, %v672_v0 }
 0x131   : > { %v699_v35 = vpop.permute.xlu1 %698 }
 0x132   : > { %v703_v53 = vadd.f32 %v699_v35, %v688_v49 }
 0x133   : > { %v697_v17 = vpop.permute.xlu0 %696 }
 0x134   : > { %v702_v55 = vadd.f32 %v697_v17, %v687_v52 }
 0x135   : > { %v714_v22 = vpop.permute.xlu1 %713 }
 0x136   : > { %v718_v56 = vadd.f32 %v714_v22, %v703_v53 }
 0x137   : > { %v712_v36 = vpop.permute.xlu0 %711 }
 0x138   : > { %v717_v58 = vadd.f32 %v712_v36, %v702_v55  ;;  %v727_v63 = vadd.f32 %v725_v57, %v718_v56 }
 0x139   : > { %v738_v21 = vpop.permute.xlu1 %737 }
 0x13a   : > { %v726_v3 = vadd.f32 %v724_v60, %v717_v58  ;;  %v742_v5 = vadd.f32 %v738_v21, %v727_v63  ;;  %v918_v21 = vstv %s1770_s4 }
 0x13b   : > { %v736_v44 = vpop.permute.xlu0 %735 }
 0x13c   : > { %v741_v6 = vadd.f32 %v736_v44, %v726_v3 }
 0x13d   : > { %v753_v48 = vpop.permute.xlu1 %752 }
 0x13e   : > { %v757_v7 = vadd.f32 %v753_v48, %v742_v5 }
 0x13f   : > { %v751_v51 = vpop.permute.xlu0 %750 }
 0x140   : > { %v756_v9 = vadd.f32 %v751_v51, %v741_v6 }
 0x141   : > { %v768_v54 = vpop.permute.xlu1 %767 }
 0x142   : > { %v772_v62 = vadd.f32 %v768_v54, %v757_v7 }
 0x143   : > { %v766_v1 = vpop.permute.xlu0 %765 }
 0x144   : > { %v771_v43 = vadd.f32 %v766_v1, %v756_v9 }
 0x145   : > { %v783_v61 = vpop.permute.xlu1 %782 }
 0x146   : > { %v787_v11 = vadd.f32 %v783_v61, %v772_v62 }
 0x147   : > { %v781_v2 = vpop.permute.xlu0 %780 }
 0x148   : > { %v786_v47 = vadd.f32 %v781_v2, %v771_v43 }
 0x149   : > { %v798_v4 = vpop.permute.xlu1 %797 }
 0x14a   : > { %v802_v14 = vadd.f32 %v798_v4, %v787_v11 }
 0x14b   : > { %v796_v59 = vpop.permute.xlu0 %795 }
 0x14c   : > { %v801_v16 = vadd.f32 %v796_v59, %v786_v47 }
 0x14d   : > { %v813_v8 = vpop.permute.xlu1 %812 }
 0x14e   : > { %v817_v18 = vadd.f32 %v813_v8, %v802_v14 }
 0x14f   : > { %v811_v10 = vpop.permute.xlu0 %810 }
 0x150   : > { %v816_v24 = vadd.f32 %v811_v10, %v801_v16  ;;  %v826_v39 = vadd.f32 %v824_v20, %v817_v18 }
 0x151   : > { %v837_v13 = vpop.permute.xlu1 %836 }
 0x152   : > { %v825_v28 = vadd.f32 %v823_v25, %v816_v24  ;;  %v841_v30 = vadd.f32 %v837_v13, %v826_v39 }
 0x153   : > { %v835_v15 = vpop.permute.xlu0 %834 }
 0x154   : > { %v840_v19 = vadd.f32 %v835_v15, %v825_v28 }
 0x155   : > { %v852_v23 = vpop.permute.xlu1 %851 }
 0x156   : > { %v856_v33 = vadd.f32 %v852_v23, %v841_v30 }
 0x157   : > { %v850_v26 = vpop.permute.xlu0 %849 }
 0x158   : > { %v855_v32 = vadd.f32 %v850_v26, %v840_v19 }
 0x159   : > { %v867_v27 = vpop.permute.xlu1 %866 }
 0x15a   : > { %v871_v37 = vadd.f32 %v867_v27, %v856_v33 }
 0x15b   : > { %v865_v29 = vpop.permute.xlu0 %864 }
 0x15c   : > { %v870_v35 = vadd.f32 %v865_v29, %v855_v32 }
 0x15d   : > { %v882_v42 = vpop.permute.xlu1 %881 }
 0x15e   : > { %v886_v17 = vadd.f32 %v882_v42, %v871_v37 }
 0x15f   : > { %v880_v31 = vpop.permute.xlu0 %879 }
 0x160   : > { %v885_v36 = vadd.f32 %v880_v31, %v870_v35 }
 0x161   : > { %v897_v34 = vpop.permute.xlu1 %896 }
 0x162   : > { %v901_v38 = vadd.f32 %v897_v34, %v886_v17 }
 0x163   : > { %v895_v22 = vpop.permute.xlu0 %894 }
 0x164   : > { %v900_v41 = vadd.f32 %v895_v22, %v885_v36 }
 0x165   : > { %v912_v40 = vpop.permute.xlu1 %911 }
 0x166   : > { %v916_v44 = vadd.f32 %v912_v40, %v901_v38 }
 0x167   : > { %v910_v45 = vpop.permute.xlu0 %909 }
 0x168   : > { %v920_v46 = vadd.f32 %v918_v21, %v916_v44  ;;  %v915_v48 = vadd.f32 %v910_v45, %v900_v41 }
 0x16a   : > { %923 = vst.msk [vmem:[%s214_s24 + $0x8] sm:$0xff] %vm921_vm0, %v920_v46  ;;  %v919_v0 = vadd.f32 %v918_v21, %v915_v48 }
 0x16c   : > { %922 = vst.msk [vmem:[%s214_s24] sm:$0xff] %vm921_vm0, %v919_v0 }
 0x16d   : > { %1209 = shalt.err (!%p1206_p13)
}
 0x16e   : > { %s1210_s6 = scalar_lea.hbm %s1780_s10, 256  ;;  %s1214_s11 = scalar_lea.hbm %s1840_s3, 2048 }
 0x16f   : > { %p1211_p1 = scmp.ne.s32.totalorder %s1780_s10, %s1210_s6  ;;  %p1215_p6 = scmp.lt.s32.totalorder %s1780_s10, %s1840_s3 }
 0x170   : > { %p1216_p3 = scmp.lt.s32.totalorder %s1214_s11, %s1210_s6 }
 0x171   : > { %p1212_p4 = pnand %p1211_p1, %p1856_p12 }
 0x172   : > { %p1217_p8 = por %p1216_p3, %p1215_p6 }
 0x173   : > { %p1213_p5 = pneg %p1212_p4 }
 0x175   : > { %p1218_p10 = pnand %p1217_p8, %p1213_p5 }
 0x177   : > { %1221 = shalt.err (!%p1218_p10)
}
 0x178   : > { %s1307_s21 = smov 128   ;;  %s1308_s24 = smov 8  }
 0x179   : > { %1074 = dma.vmem_to_hbm [thread:$0]  (%p1856_p12), %s1782_s28, 256, %s1780_s10, %s1786_s1, %s1307_s21, %s1307_s21, %s1308_s24  }
 0x17a PF: > { %p1091_p0 = scmp.ge.s32.totalorder %s1296_s19, 2  ;;  %s955_s7 = sand.u32 1, %s1268_s12  }
 0x17b   : > { %p1857_p2 = scmp.ne.s32.totalorder %s1848_s27, 0  ;;  %s956_s15 = scalar_lea.sflag [#allocation3], %s955_s7 }
 0x17d   : > { %p1084_p7 = pnand %p1091_p0, %p1857_p2 }
 0x17f   : > { %p1085_p9 = pneg %p1084_p7 }
 0x181   : > { %1263 = dma.done.wait (%p1085_p9), %s956_s15, 256  }
 0x182   : > { %1265 = vsyncadd (%p1085_p9), %s956_s15, 4294967040  ;;  %s18_s19 = sadd.s32 1, %s1296_s19   ;;  %s1858_s12 = smov %s1272_s13 }
 0x183   : > { %p15_p11 = scmp.ge.s32.totalorder %s18_s19, 10   ;;  %s1859_s13 = smov %s1276_s14 }
 0x184   : > { %s1860_s14 = smov %s1411_s8  ;;  %s1861_s15 = smov %s1288_s17 }
 0x185   : > { %s1862_s16 = smov %s1292_s18  ;;  %s1863_s17 = smov %s1866_s22 }
 0x186   : > { %s1864_s18 = smov %s1870_s23  ;;  %17 = sbr.rel (!%p15_p11) target bundleno = 10 (0xa), region = 76 }
 0x18b   :  { %961 = vsyncpa [#allocation3], 1 }
 0x18c   :  { %963 = vsyncpa [#allocation3 + $0x1], 1 }
 0x18d   :  { %964 = vsyncpa [#allocation4], 1 }
 0x18e   :  { %966 = vsyncpa [#allocation4 + $0x1], 1 }
 0x18f   :  { %967 = vsyncpa [#allocation6], 1 }

</bundles_post_ra>
